<compile_context>
chip_gen: v5e
topology: v5e:2x2
jax: 0.10.0
libtpu: 0.0.40
codegen_flags: <defaults>
</compile_context>

<pallas_src>
import functools

import jax
import jax.numpy as jnp
from jax.experimental import pallas as pl
from jax.experimental.pallas import tpu as pltpu

_LANES = 128
_GROUPS = 4  # batch sub-groups stacked on sublanes (block-diagonal MXU packing)


def _cdiv(a, b):
    return -(-a // b)


def _epilogue_dtype():
    """bf16 bias/ReLU epilogue on chips with a bf16 VPU (v6e/v7x); f32 otherwise."""
    try:
        kind = jax.devices()[0].device_kind.lower()
    except Exception:
        return jnp.float32
    if any(tag in kind for tag in ("v6", "v7", "7x")):
        return jnp.bfloat16
    return jnp.float32


def _block_diag(w, g):
    """(out, in) -> (g*out, g*in) block-diagonal (g copies of w on the diagonal)."""
    o, i = w.shape
    bd = jnp.zeros((g * o, g * i), w.dtype)
    for k in range(g):
        bd = bd.at[k * o:(k + 1) * o, k * i:(k + 1) * i].set(w)
    return bd


def _mlp_kernel(x_ref,
                w1_ref, b1_ref,
                w2_ref, b2_ref,
                w3_ref, b3_ref,
                w4_ref, b4_ref,
                o_ref, *, ep_dtype):
    # x tile: (4*G, TBc) f32 -- G batch groups stacked on sublanes, batch on lanes.
    x = x_ref[...]

    # Layer 1 on the MXU (tiny K -> essentially free in the MXU slot); f32
    # operands + f32 bias/ReLU for input-side parity with the torch module.
    h = jnp.dot(w1_ref[...], x, preferred_element_type=jnp.float32)     # (64G, TBc)
    h = jnp.maximum(h + b1_ref[...], 0.0).astype(jnp.bfloat16)

    # Layers 2-3: bf16 operands on the block-diagonal-packed MXU; bias + ReLU
    # in ep_dtype (bf16 on v6e/v7x halves VALU work & vreg pressure; f32 on v5e).
    h = jnp.dot(w2_ref[...], h, preferred_element_type=ep_dtype)         # (64G, TBc)
    h = jnp.maximum(h + b2_ref[...].astype(ep_dtype), 0.0).astype(jnp.bfloat16)

    h = jnp.dot(w3_ref[...], h, preferred_element_type=ep_dtype)         # (64G, TBc)
    h = jnp.maximum(h + b3_ref[...].astype(ep_dtype), 0.0).astype(jnp.bfloat16)

    # Final layer: f32 accumulation + f32 bias for output parity.
    y = jnp.dot(w4_ref[...], h, preferred_element_type=jnp.float32)      # (2G, TBc)
    o_ref[...] = (y + b4_ref[...]).astype(o_ref.dtype)


def _tile_plan(batch, tile_b, groups):
    unit = groups * _LANES                      # smallest legal batch tile (512)
    b_units = max(1, _cdiv(batch, unit))
    cap_units = max(1, _cdiv(max(tile_b, unit), unit))
    # >=2 grid steps whenever the batch spans >=2 units, so both v7x TCs get work.
    n_tiles = max(_cdiv(b_units, cap_units), 2 if b_units >= 2 else 1)
    tb_units = _cdiv(b_units, n_tiles)
    tb = tb_units * unit
    return n_tiles, tb, n_tiles * tb


def simple_mle_forward(x, params, *, tile_b=4096):
    """x: (B, 4) float32 -> (B, 2) float32. Mirrors the PyTorch nn.Sequential."""
    (w1, b1), (w2, b2), (w3, b3), (w4, b4) = params
    B, d_in = x.shape
    assert d_in == 4
    G = _GROUPS
    d_out = w4.shape[1]
    ep_dtype = _epilogue_dtype()

    n_tiles, tb, Bp = _tile_plan(B, tile_b, G)
    tbc = tb // G                               # lane width per tile (mult. of 128)

    # Pack the batch: each tile's G contiguous sub-groups are stacked along
    # sublanes; x_packed[g*4 + f, t*tbc + j] = x_pad[t*tb + g*tbc + j, f].
    x_pad = jnp.pad(x, ((0, Bp - B), (0, 0)))
    x_packed = (x_pad.reshape(n_tiles, G, tbc, d_in)
                .transpose(1, 3, 0, 2)
                .reshape(G * d_in, n_tiles * tbc))

    # Block-diagonal (out, in) weights: fills the 256x256 MXU on v6e/v7x.
    w1_bd = _block_diag(w1.T, G)                          # (256, 16)  f32
    w2_bd = _block_diag(w2.T, G).astype(jnp.bfloat16)     # (256, 256) bf16
    w3_bd = _block_diag(w3.T, G).astype(jnp.bfloat16)     # (256, 256) bf16
    w4_bd = _block_diag(w4.T, G).astype(jnp.bfloat16)     # (8, 256)   bf16
    b1_p, b2_p, b3_p, b4_p = (jnp.tile(b.reshape(-1, 1), (G, 1))
                              for b in (b1, b2, b3, b4))  # (64G,1) / (2G,1) f32

    # Constant index maps -> parameters fetched once and kept VMEM-resident.
    def rep(a):
        return pl.BlockSpec(a.shape, lambda i: (0, 0))

    in_specs = [
        pl.BlockSpec((G * d_in, tbc), lambda i: (0, i)),   # packed x tile
        rep(w1_bd), rep(b1_p),
        rep(w2_bd), rep(b2_p),
        rep(w3_bd), rep(b3_p),
        rep(w4_bd), rep(b4_p),
    ]
    out_specs = pl.BlockSpec((G * d_out, tbc), lambda i: (0, i))

    out_packed = pl.pallas_call(
        functools.partial(_mlp_kernel, ep_dtype=ep_dtype),
        out_shape=jax.ShapeDtypeStruct((G * d_out, n_tiles * tbc), x.dtype),
        grid_spec=pltpu.PrefetchScalarGridSpec(
            num_scalar_prefetch=0,
            grid=(n_tiles,),
            in_specs=in_specs,
            out_specs=out_specs,
        ),
        compiler_params=pltpu.CompilerParams(
            dimension_semantics=("parallel",)),   # batch tiles -> both TCs on v7x
    )(x_packed, w1_bd, b1_p, w2_bd, b2_p, w3_bd, b3_p, w4_bd, b4_p)

    # Unpack (2G, Bp/G) -> (B, 2): inverse of the input packing.
    out = (out_packed.reshape(G, d_out, n_tiles, tbc)
           .transpose(2, 0, 3, 1)
           .reshape(Bp, d_out))
    return out[:B]


def init_params(key):
    """Deterministic init matching nn.Linear shapes: (in, out) weights + (1, out) bias."""
    dims = [(4, 64), (64, 64), (64, 64), (64, 2)]
    params = []
    for d_in, d_out in dims:
        key, kw, kb = jax.random.split(key, 3)
        bound = 1.0 / jnp.sqrt(d_in)
        w = jax.random.uniform(kw, (d_in, d_out), jnp.float32, -bound, bound)
        b = jax.random.uniform(kb, (1, d_out), jnp.float32, -bound, bound)
        params.append((w, b))
    return params


def reference_forward(x, params, ep_dtype=jnp.float32):
    """Pure-JAX reference following the same numeric recipe as the kernel."""
    (w1, b1), (w2, b2), (w3, b3), (w4, b4) = params
    h = jnp.maximum(jnp.dot(x, w1, preferred_element_type=jnp.float32) + b1, 0.0)
    h = h.astype(jnp.bfloat16)
    h = jnp.dot(h, w2.astype(jnp.bfloat16), preferred_element_type=ep_dtype)
    h = jnp.maximum(h + b2.astype(ep_dtype), 0.0).astype(jnp.bfloat16)
    h = jnp.dot(h, w3.astype(jnp.bfloat16), preferred_element_type=ep_dtype)
    h = jnp.maximum(h + b3.astype(ep_dtype), 0.0).astype(jnp.bfloat16)
    y = jnp.dot(h, w4.astype(jnp.bfloat16), preferred_element_type=jnp.float32)
    return y + b4


if __name__ == "__main__":
    key = jax.random.PRNGKey(0)
    key, kx = jax.random.split(key)
    params = init_params(key)
    ep = _epilogue_dtype()

    # Small demo batch (module takes (B, 4) inputs).
    B = 8
    x = jax.random.normal(kx, (B, 4), jnp.float32)
    out = jax.block_until_ready(simple_mle_forward(x, params))
    ref = reference_forward(x, params, ep)
    assert out.shape == (B, 2), out.shape
    assert jnp.allclose(out, ref, atol=1e-2, rtol=1e-2), (
        float(jnp.max(jnp.abs(out - ref))))

    # Multi-tile / padded path (grid >= 2, batch not tile-aligned).
    key, kx2 = jax.random.split(key)
    B2 = 1500
    x2 = jax.random.normal(kx2, (B2, 4), jnp.float32)
    out2 = jax.block_until_ready(simple_mle_forward(x2, params, tile_b=1024))
    ref2 = reference_forward(x2, params, ep)
    assert out2.shape == (B2, 2), out2.shape
    assert jnp.allclose(out2, ref2, atol=1e-2, rtol=1e-2), (
        float(jnp.max(jnp.abs(out2 - ref2))))

    print("KERNEL_OK")
</pallas_src>

<mosaic_0001>
module attributes {stable_mosaic.version = 11 : i64} {
  func.func @_mlp_kernel(%arg0: i32, %arg1: memref<16x128xf32, #tpu.memory_space<vmem>>, %arg2: memref<256x16xf32, #tpu.memory_space<vmem>>, %arg3: memref<256x1xf32, #tpu.memory_space<vmem>>, %arg4: memref<256x256xbf16, #tpu.memory_space<vmem>>, %arg5: memref<256x1xf32, #tpu.memory_space<vmem>>, %arg6: memref<256x256xbf16, #tpu.memory_space<vmem>>, %arg7: memref<256x1xf32, #tpu.memory_space<vmem>>, %arg8: memref<8x256xbf16, #tpu.memory_space<vmem>>, %arg9: memref<8x1xf32, #tpu.memory_space<vmem>>, %arg10: memref<8x128xf32, #tpu.memory_space<vmem>>) attributes {dimension_semantics = [#tpu.dimension_semantics<parallel>], iteration_bounds = array<i64: 1>, scalar_prefetch = 0 : i64, scratch_operands = 0 : i64, tpu.core_type = #tpu.core_type<tc>, window_params = [{transform_indices = @transform_0, window_bounds = array<i64: 16, 128>}, {pipeline_mode = #tpu.pipeline_mode<synchronous>, transform_indices = @transform_1, window_bounds = array<i64: 256, 16>}, {pipeline_mode = #tpu.pipeline_mode<synchronous>, transform_indices = @transform_2, window_bounds = array<i64: 256, 1>}, {pipeline_mode = #tpu.pipeline_mode<synchronous>, transform_indices = @transform_3, window_bounds = array<i64: 256, 256>}, {pipeline_mode = #tpu.pipeline_mode<synchronous>, transform_indices = @transform_4, window_bounds = array<i64: 256, 1>}, {pipeline_mode = #tpu.pipeline_mode<synchronous>, transform_indices = @transform_5, window_bounds = array<i64: 256, 256>}, {pipeline_mode = #tpu.pipeline_mode<synchronous>, transform_indices = @transform_6, window_bounds = array<i64: 256, 1>}, {pipeline_mode = #tpu.pipeline_mode<synchronous>, transform_indices = @transform_7, window_bounds = array<i64: 8, 256>}, {pipeline_mode = #tpu.pipeline_mode<synchronous>, transform_indices = @transform_8, window_bounds = array<i64: 8, 1>}, {transform_indices = @transform_9, window_bounds = array<i64: 8, 128>}]} {
    %c0 = arith.constant 0 : index
    %c0_0 = arith.constant 0 : index
    %0 = vector.load %arg1[%c0, %c0_0] : memref<16x128xf32, #tpu.memory_space<vmem>>, vector<16x128xf32>
    %c0_1 = arith.constant 0 : index
    %c0_2 = arith.constant 0 : index
    %1 = vector.load %arg2[%c0_1, %c0_2] : memref<256x16xf32, #tpu.memory_space<vmem>>, vector<256x16xf32>
    %cst = arith.constant dense<0.000000e+00> : vector<256x128xf32>
    %2 = tpu.matmul %1, %0, %cst {dimension_numbers = #tpu.dot_dimension_numbers<[1], [0], [0], [1], [0, 0, 1, 1], [], []>} : vector<256x16xf32>, vector<16x128xf32>, vector<256x128xf32> -> vector<256x128xf32>
    %c0_3 = arith.constant 0 : index
    %c0_4 = arith.constant 0 : index
    %3 = vector.load %arg3[%c0_3, %c0_4] : memref<256x1xf32, #tpu.memory_space<vmem>>, vector<256x1xf32>
    %4 = vector.broadcast %3 : vector<256x1xf32> to vector<256x128xf32>
    %5 = arith.addf %2, %4 : vector<256x128xf32>
    %cst_5 = arith.constant 0.000000e+00 : f32
    %6 = vector.broadcast %cst_5 : f32 to vector<256x128xf32>
    %7 = arith.maximumf %5, %6 : vector<256x128xf32>
    %8 = arith.truncf %7 : vector<256x128xf32> to vector<256x128xbf16>
    %c0_6 = arith.constant 0 : index
    %c0_7 = arith.constant 0 : index
    %9 = vector.load %arg4[%c0_6, %c0_7] : memref<256x256xbf16, #tpu.memory_space<vmem>>, vector<256x256xbf16>
    %cst_8 = arith.constant dense<0.000000e+00> : vector<256x128xf32>
    %10 = tpu.matmul %9, %8, %cst_8 {dimension_numbers = #tpu.dot_dimension_numbers<[1], [0], [0], [1], [0, 0, 1, 1], [], []>} : vector<256x256xbf16>, vector<256x128xbf16>, vector<256x128xf32> -> vector<256x128xf32>
    %c0_9 = arith.constant 0 : index
    %c0_10 = arith.constant 0 : index
    %11 = vector.load %arg5[%c0_9, %c0_10] : memref<256x1xf32, #tpu.memory_space<vmem>>, vector<256x1xf32>
    %12 = vector.broadcast %11 : vector<256x1xf32> to vector<256x128xf32>
    %13 = arith.addf %10, %12 : vector<256x128xf32>
    %cst_11 = arith.constant 0.000000e+00 : f32
    %14 = vector.broadcast %cst_11 : f32 to vector<256x128xf32>
    %15 = arith.maximumf %13, %14 : vector<256x128xf32>
    %16 = arith.truncf %15 : vector<256x128xf32> to vector<256x128xbf16>
    %c0_12 = arith.constant 0 : index
    %c0_13 = arith.constant 0 : index
    %17 = vector.load %arg6[%c0_12, %c0_13] : memref<256x256xbf16, #tpu.memory_space<vmem>>, vector<256x256xbf16>
    %cst_14 = arith.constant dense<0.000000e+00> : vector<256x128xf32>
    %18 = tpu.matmul %17, %16, %cst_14 {dimension_numbers = #tpu.dot_dimension_numbers<[1], [0], [0], [1], [0, 0, 1, 1], [], []>} : vector<256x256xbf16>, vector<256x128xbf16>, vector<256x128xf32> -> vector<256x128xf32>
    %c0_15 = arith.constant 0 : index
    %c0_16 = arith.constant 0 : index
    %19 = vector.load %arg7[%c0_15, %c0_16] : memref<256x1xf32, #tpu.memory_space<vmem>>, vector<256x1xf32>
    %20 = vector.broadcast %19 : vector<256x1xf32> to vector<256x128xf32>
    %21 = arith.addf %18, %20 : vector<256x128xf32>
    %cst_17 = arith.constant 0.000000e+00 : f32
    %22 = vector.broadcast %cst_17 : f32 to vector<256x128xf32>
    %23 = arith.maximumf %21, %22 : vector<256x128xf32>
    %24 = arith.truncf %23 : vector<256x128xf32> to vector<256x128xbf16>
    %c0_18 = arith.constant 0 : index
    %c0_19 = arith.constant 0 : index
    %25 = vector.load %arg8[%c0_18, %c0_19] : memref<8x256xbf16, #tpu.memory_space<vmem>>, vector<8x256xbf16>
    %cst_20 = arith.constant dense<0.000000e+00> : vector<8x128xf32>
    %26 = tpu.matmul %25, %24, %cst_20 {dimension_numbers = #tpu.dot_dimension_numbers<[1], [0], [0], [1], [0, 0, 1, 1], [], []>} : vector<8x256xbf16>, vector<256x128xbf16>, vector<8x128xf32> -> vector<8x128xf32>
    %c0_21 = arith.constant 0 : index
    %c0_22 = arith.constant 0 : index
    %27 = vector.load %arg9[%c0_21, %c0_22] : memref<8x1xf32, #tpu.memory_space<vmem>>, vector<8x1xf32>
    %28 = vector.broadcast %27 : vector<8x1xf32> to vector<8x128xf32>
    %29 = arith.addf %26, %28 : vector<8x128xf32>
    %c0_23 = arith.constant 0 : index
    %c0_24 = arith.constant 0 : index
    %30 = vector.load %arg10[%c0_23, %c0_24] : memref<8x128xf32, #tpu.memory_space<vmem>>, vector<8x128xf32>
    tpu.vector_store %arg10[%c0_23, %c0_24], %29 {strides = array<i32>} : memref<8x128xf32, #tpu.memory_space<vmem>>, vector<8x128xf32>,
    return
  }
  func.func @transform_0(%arg0: i32) -> (i32, i32) {
    %c0_i32 = arith.constant 0 : i32
    %c0_i32_0 = arith.constant 0 : i32
    return %c0_i32, %arg0 : i32, i32
  }
  func.func @transform_1(%arg0: i32) -> (i32, i32) {
    %c0_i32 = arith.constant 0 : i32
    %c0_i32_0 = arith.constant 0 : i32
    %c0_i32_1 = arith.constant 0 : i32
    return %c0_i32, %c0_i32_0 : i32, i32
  }
  func.func @transform_2(%arg0: i32) -> (i32, i32) {
    %c0_i32 = arith.constant 0 : i32
    %c0_i32_0 = arith.constant 0 : i32
    %c0_i32_1 = arith.constant 0 : i32
    return %c0_i32, %c0_i32_0 : i32, i32
  }
  func.func @transform_3(%arg0: i32) -> (i32, i32) {
    %c0_i32 = arith.constant 0 : i32
    %c0_i32_0 = arith.constant 0 : i32
    %c0_i32_1 = arith.constant 0 : i32
    return %c0_i32, %c0_i32_0 : i32, i32
  }
  func.func @transform_4(%arg0: i32) -> (i32, i32) {
    %c0_i32 = arith.constant 0 : i32
    %c0_i32_0 = arith.constant 0 : i32
    %c0_i32_1 = arith.constant 0 : i32
    return %c0_i32, %c0_i32_0 : i32, i32
  }
  func.func @transform_5(%arg0: i32) -> (i32, i32) {
    %c0_i32 = arith.constant 0 : i32
    %c0_i32_0 = arith.constant 0 : i32
    %c0_i32_1 = arith.constant 0 : i32
    return %c0_i32, %c0_i32_0 : i32, i32
  }
  func.func @transform_6(%arg0: i32) -> (i32, i32) {
    %c0_i32 = arith.constant 0 : i32
    %c0_i32_0 = arith.constant 0 : i32
    %c0_i32_1 = arith.constant 0 : i32
    return %c0_i32, %c0_i32_0 : i32, i32
  }
  func.func @transform_7(%arg0: i32) -> (i32, i32) {
    %c0_i32 = arith.constant 0 : i32
    %c0_i32_0 = arith.constant 0 : i32
    %c0_i32_1 = arith.constant 0 : i32
    return %c0_i32, %c0_i32_0 : i32, i32
  }
  func.func @transform_8(%arg0: i32) -> (i32, i32) {
    %c0_i32 = arith.constant 0 : i32
    %c0_i32_0 = arith.constant 0 : i32
    %c0_i32_1 = arith.constant 0 : i32
    return %c0_i32, %c0_i32_0 : i32, i32
  }
  func.func @transform_9(%arg0: i32) -> (i32, i32) {
    %c0_i32 = arith.constant 0 : i32
    %c0_i32_0 = arith.constant 0 : i32
    return %c0_i32, %arg0 : i32, i32
  }
}

</mosaic_0001>

<bundles_post_ra>
// kernel: tpu_custom_call.1
= control target key start
LH: loop header
LB: loop body
LE: loop exit
PB: predicated region body
PF: predicated region fallthrough
CT: control target
= control target key end

     0   :  { %v2183_v1 = vmov 0   ;;  %vm259_vm0 = vcmask 130048   ;;  %s3372_s0 = inlined_call_operand.vmem [shape: f32[16,128], index: 0, kind: input, shape index: {}]   ;;  %s3373_s1 = inlined_call_operand.vmem [shape: f32[256,16], index: 1, kind: input, shape index: {}]   ;;  %s3374_s2 = inlined_call_operand.vmem [shape: f32[256,1], index: 2, kind: input, shape index: {}]   ;;  %s3375_s3 = inlined_call_operand.vmem [shape: bf16[256,256], index: 3, kind: input, shape index: {}]   ;;  %s3376_s4 = inlined_call_operand.vmem [shape: f32[256,1], index: 4, kind: input, shape index: {}]   ;;  %s3377_s5 = inlined_call_operand.vmem [shape: bf16[256,256], index: 5, kind: input, shape index: {}]   ;;  %s3378_s6 = inlined_call_operand.vmem [shape: f32[256,1], index: 6, kind: input, shape index: {}]   ;;  %s3379_s7 = inlined_call_operand.vmem [shape: bf16[8,256], index: 7, kind: input, shape index: {}]   ;;  %s3380_s8 = inlined_call_operand.vmem [shape: f32[8,1], index: 8, kind: input, shape index: {}]   ;;  %s3381_s9 = inlined_call_operand.hbm [shape: f32[8,128], index: 9, kind: output, shape index: {}]  }
   0x1   :  { %v34_v0 = vld [vmem:[%s3372_s0 + $0x8] sm:$0xff]  ;;  %2156 = vset.pattern.permute.xlu2 %v2183_v1  ;;  %2155 = vset.pattern.permute.xlu1 %v2183_v1  ;;  %v97_v2 = vld [vmem:[%s3374_s2 + $0xf0] sm:$0xff]  ;;  %v95_v3 = vld [vmem:[%s3374_s2 + $0xe0] sm:$0xff] }
   0x2   :  { %2154 = vset.pattern.permute.xlu0 %v2183_v1  ;;  %370 = vmatpush.msra.mxu0 %v34_v0  ;;  %v81_v4 = vld [vmem:[%s3374_s2 + $0x70] sm:$0xff]  ;;  %v33_v5 = vld [vmem:[%s3372_s0] sm:$0xff]  ;;  %v50_v7 = vld [vmem:[%s3373_s1 + $0x78] sm:$0xff] }
   0x3   :  { %2147 = vmatpush.msra.mxu2 %v34_v0  ;;  %2148 = vmatpush.msra.mxu3 %v34_v0  ;;  %v35_v6 = vld [vmem:[%s3373_s1] sm:$0xff]  ;;  %v57_v8 = vld [vmem:[%s3373_s1 + $0xb0] sm:$0xff]  ;;  %v46_v9 = vld [vmem:[%s3373_s1 + $0x58] sm:$0xff] }
   0x4   :  { %251 = vperm.xlu0 %2154, %v97_v2   ;;  %241 = vperm.xlu2 %2156, %v95_v3   ;;  %v98_v10 = vld [vmem:[%s3374_s2 + $0xf8] sm:$0xff]  ;;  %v96_v11 = vld [vmem:[%s3374_s2 + $0xe8] sm:$0xff] }
   0x5   :  { %171 = vperm.xlu1 %2155, %v81_v4   ;;  %2146 = vmatpush.msra.mxu1 %v34_v0  ;;  %v82_v12 = vld [vmem:[%s3374_s2 + $0x78] sm:$0xff]  ;;  %v36_v13 = vld [vmem:[%s3373_s1 + $0x8] sm:$0xff] }
   0x6   :  { %371 = vmatpush.msra.mxu0 %v33_v5  ;;  %2150 = vmatpush.msra.mxu2 %v33_v5 }
   0x7   :  { %2151 = vmatpush.msra.mxu3 %v33_v5  ;;  %1794 = vmatmul.msk.f32.vlgmr.msra.gmra.mxu0 %vm259_vm0, %v35_v6 }
   0x8   :  { %1809 = vmatmul.msk.f32.vlgmr.msra.gmra.mxu2 %vm259_vm0, %v50_v7  ;;  %1816 = vmatmul.msk.f32.vlgmr.msra.gmra.mxu3 %vm259_vm0, %v57_v8 }
   0x9   :  { %2149 = vmatpush.msra.mxu1 %v33_v5 }
   0xa   :  { %1805 = vmatmul.msk.f32.vlgmr.msra.gmra.mxu1 %vm259_vm0, %v46_v9 }
   0xc   :  { %256 = vperm.xlu0 %2154, %v98_v10   ;;  %246 = vperm.xlu2 %2156, %v96_v11  }
   0xd   :  { %14 = vsyncpa [#allocation3], 0  ;;  %176 = vperm.xlu1 %2155, %v82_v12   ;;  %v51_v14 = vld [vmem:[%s3373_s1 + $0x80] sm:$0xff]  ;;  %v58_v15 = vld [vmem:[%s3373_s1 + $0xb8] sm:$0xff]  ;;  %s1785_s25 = sshll.u32 %s3381_s9, 4  ;;  %s1786_s25 = int_to_ptr.hbm [resolvable:$true] %s1785_s25 }
   0xe   :  { %v47_v16 = vld [vmem:[%s3373_s1 + $0x60] sm:$0xff]  ;;  %v93_v17 = vld [vmem:[%s3374_s2 + $0xd0] sm:$0xff]  ;;  %v80_v19 = vld [vmem:[%s3374_s2 + $0x68] sm:$0xff] }
   0xf   :  { %1795 = vmatmul.msk.f32.gmra.mxu0 %vm259_vm0, %v36_v13  ;;  %v79_v18 = vld [vmem:[%s3374_s2 + $0x60] sm:$0xff]  ;;  %v37_v20 = vld [vmem:[%s3373_s1 + $0x10] sm:$0xff]  ;;  %v52_v21 = vld [vmem:[%s3373_s1 + $0x88] sm:$0xff] }
  0x10   :  { %1810 = vmatmul.msk.f32.gmra.mxu2 %vm259_vm0, %v51_v14  ;;  %1817 = vmatmul.msk.f32.gmra.mxu3 %vm259_vm0, %v58_v15  ;;  %v59_v22 = vld [vmem:[%s3373_s1 + $0xc0] sm:$0xff]  ;;  %v48_v23 = vld [vmem:[%s3373_s1 + $0x68] sm:$0xff]  ;;  %v94_v24 = vld [vmem:[%s3374_s2 + $0xd8] sm:$0xff] }
  0x11   :  { %v78_v25 = vld [vmem:[%s3374_s2 + $0x58] sm:$0xff]  ;;  %v77_v26 = vld [vmem:[%s3374_s2 + $0x50] sm:$0xff]  ;;  %v60_v29 = vld [vmem:[%s3373_s1 + $0xc8] sm:$0xff] }
  0x12   :  { %1806 = vmatmul.msk.f32.gmra.mxu1 %vm259_vm0, %v47_v16  ;;  %v38_v27 = vld [vmem:[%s3373_s1 + $0x18] sm:$0xff]  ;;  %v53_v28 = vld [vmem:[%s3373_s1 + $0x90] sm:$0xff]  ;;  %v91_v31 = vld [vmem:[%s3374_s2 + $0xc0] sm:$0xff] }
  0x13   :  { %v49_v30 = vld [vmem:[%s3373_s1 + $0x70] sm:$0xff]  ;;  %v75_v32 = vld [vmem:[%s3374_s2 + $0x40] sm:$0xff]  ;;  %v92_v33 = vld [vmem:[%s3374_s2 + $0xc8] sm:$0xff] }
  0x14   :  { %231 = vperm.xlu2 %2156, %v93_v17   ;;  %161 = vperm.xlu0 %2154, %v79_v18   ;;  %v39_v34 = vld [vmem:[%s3373_s1 + $0x20] sm:$0xff]  ;;  %v54_v35 = vld [vmem:[%s3373_s1 + $0x98] sm:$0xff]  ;;  %v61_v36 = vld [vmem:[%s3373_s1 + $0xd0] sm:$0xff] }
  0x15   :  { %166 = vperm.xlu1 %2155, %v80_v19   ;;  %v76_v37 = vld [vmem:[%s3374_s2 + $0x48] sm:$0xff]  ;;  %v90_v38 = vld [vmem:[%s3374_s2 + $0xb8] sm:$0xff]  ;;  %v89_v39 = vld [vmem:[%s3374_s2 + $0xb0] sm:$0xff] }
  0x16   :  { %v40_v40 = vld [vmem:[%s3373_s1 + $0x28] sm:$0xff]  ;;  %v55_v41 = vld [vmem:[%s3373_s1 + $0xa0] sm:$0xff]  ;;  %v62_v42 = vld [vmem:[%s3373_s1 + $0xd8] sm:$0xff] }
  0x17   :  { %1796 = vmatmul.msk.f32.gmra.mxu0 %vm259_vm0, %v37_v20  ;;  %v87_v43 = vld [vmem:[%s3374_s2 + $0xa0] sm:$0xff]  ;;  %v73_v44 = vld [vmem:[%s3374_s2 + $0x30] sm:$0xff]  ;;  %v74_v45 = vld [vmem:[%s3374_s2 + $0x38] sm:$0xff] }
  0x18   :  { %1811 = vmatmul.msk.f32.gmra.mxu2 %vm259_vm0, %v52_v21  ;;  %1818 = vmatmul.msk.f32.gmra.mxu3 %vm259_vm0, %v59_v22  ;;  %v41_v46 = vld [vmem:[%s3373_s1 + $0x30] sm:$0xff]  ;;  %v56_v47 = vld [vmem:[%s3373_s1 + $0xa8] sm:$0xff]  ;;  %v63_v48 = vld [vmem:[%s3373_s1 + $0xe0] sm:$0xff] }
  0x19   :  { %v88_v49 = vld [vmem:[%s3374_s2 + $0xa8] sm:$0xff]  ;;  %v71_v51 = vld [vmem:[%s3374_s2 + $0x20] sm:$0xff]  ;;  %v42_v52 = vld [vmem:[%s3373_s1 + $0x38] sm:$0xff] }
  0x1a   :  { %1807 = vmatmul.msk.f32.gmra.mxu1 %vm259_vm0, %v48_v23  ;;  %v72_v50 = vld [vmem:[%s3374_s2 + $0x28] sm:$0xff]  ;;  %v85_v54 = vld [vmem:[%s3374_s2 + $0x90] sm:$0xff]  ;;  %v86_v56 = vld [vmem:[%s3374_s2 + $0x98] sm:$0xff] }
  0x1b   :  { %v64_v53 = vld [vmem:[%s3373_s1 + $0xe8] sm:$0xff]  ;;  %v69_v55 = vld [vmem:[%s3374_s2 + $0x10] sm:$0xff]  ;;  %v43_v57 = vld [vmem:[%s3373_s1 + $0x40] sm:$0xff] }
  0x1c   :  { %236 = vperm.xlu0 %2154, %v94_v24   ;;  %156 = vperm.xlu2 %2156, %v78_v25   ;;  %v65_v58 = vld [vmem:[%s3373_s1 + $0xf0] sm:$0xff]  ;;  %v70_v59 = vld [vmem:[%s3374_s2 + $0x18] sm:$0xff]  ;;  %v84_v60 = vld [vmem:[%s3374_s2 + $0x88] sm:$0xff] }
  0x1d   :  { %151 = vperm.xlu1 %2155, %v77_v26   ;;  %v83_v61 = vld [vmem:[%s3374_s2 + $0x80] sm:$0xff]  ;;  %v44_v62 = vld [vmem:[%s3373_s1 + $0x48] sm:$0xff]  ;;  %v66_v63 = vld [vmem:[%s3373_s1 + $0xf8] sm:$0xff] }
  0x1e   :  { %v563_v0 = vld [vmem:[%s3376_s4 + $0x70] sm:$0xff]  ;;  %v67_v1 = vld [vmem:[%s3374_s2] sm:$0xff]  ;;  %v68_v2 = vld [vmem:[%s3374_s2 + $0x8] sm:$0xff] }
  0x1f   :  { %1797 = vmatmul.msk.f32.gmra.mxu0 %vm259_vm0, %v38_v27  ;;  %v45_v3 = vld [vmem:[%s3373_s1 + $0x50] sm:$0xff]  ;;  %v562_v4 = vld [vmem:[%s3376_s4 + $0x68] sm:$0xff]  ;;  %v564_v5 = vld [vmem:[%s3376_s4 + $0x78] sm:$0xff] }
  0x20   :  { %1812 = vmatmul.msk.f32.gmra.mxu2 %vm259_vm0, %v53_v28  ;;  %1819 = vmatmul.msk.f32.gmra.mxu3 %vm259_vm0, %v60_v29  ;;  %v561_v6 = vld [vmem:[%s3376_s4 + $0x60] sm:$0xff]  ;;  %v579_v7 = vld [vmem:[%s3376_s4 + $0xf0] sm:$0xff]  ;;  %v560_v9 = vld [vmem:[%s3376_s4 + $0x58] sm:$0xff] }
  0x21   :  { %v559_v8 = vld [vmem:[%s3376_s4 + $0x50] sm:$0xff]  ;;  %v558_v10 = vld [vmem:[%s3376_s4 + $0x48] sm:$0xff]  ;;  %v580_v11 = vld [vmem:[%s3376_s4 + $0xf8] sm:$0xff] }
  0x22   :  { %1808 = vmatmul.msk.f32.gmra.mxu1 %vm259_vm0, %v49_v30  ;;  %v557_v12 = vld [vmem:[%s3376_s4 + $0x40] sm:$0xff]  ;;  %v555_v13 = vld [vmem:[%s3376_s4 + $0x30] sm:$0xff]  ;;  %v578_v15 = vld [vmem:[%s3376_s4 + $0xe8] sm:$0xff] }
  0x23   :  { %v577_v14 = vld [vmem:[%s3376_s4 + $0xe0] sm:$0xff]  ;;  %v576_v16 = vld [vmem:[%s3376_s4 + $0xd8] sm:$0xff]  ;;  %v575_v18 = vld [vmem:[%s3376_s4 + $0xd0] sm:$0xff] }
  0x24   :  { %221 = vperm.xlu0 %2154, %v91_v31   ;;  %141 = vperm.xlu2 %2156, %v75_v32   ;;  %v556_v17 = vld [vmem:[%s3376_s4 + $0x38] sm:$0xff]  ;;  %v573_v21 = vld [vmem:[%s3376_s4 + $0xc0] sm:$0xff]  ;;  %v554_v23 = vld [vmem:[%s3376_s4 + $0x28] sm:$0xff] }
  0x25   :  { %226 = vperm.xlu1 %2155, %v92_v33   ;;  %v553_v22 = vld [vmem:[%s3376_s4 + $0x20] sm:$0xff]  ;;  %v552_v28 = vld [vmem:[%s3376_s4 + $0x18] sm:$0xff]  ;;  %v574_v29 = vld [vmem:[%s3376_s4 + $0xc8] sm:$0xff] }
  0x26   :  { %v551_v30 = vld [vmem:[%s3376_s4 + $0x10] sm:$0xff] }
  0x27   :  { %1798 = vmatmul.msk.f32.gmra.mxu0 %vm259_vm0, %v39_v34 }
  0x28   :  { %1813 = vmatmul.msk.f32.gmra.mxu2 %vm259_vm0, %v54_v35  ;;  %1820 = vmatmul.msk.f32.gmra.mxu3 %vm259_vm0, %v61_v36  ;;  %v549_v36 = vld [vmem:[%s3376_s4] sm:$0xff] }
  0x2c   :  { %146 = vperm.xlu0 %2154, %v76_v37   ;;  %216 = vperm.xlu2 %2156, %v90_v38   ;;  %v571_v37 = vld [vmem:[%s3376_s4 + $0xb0] sm:$0xff] }
  0x2d   :  { %211 = vperm.xlu1 %2155, %v89_v39   ;;  %v572_v39 = vld [vmem:[%s3376_s4 + $0xb8] sm:$0xff] }
  0x2f   :  { %1799 = vmatmul.msk.f32.gmra.mxu0 %vm259_vm0, %v40_v40 }
  0x30   :  { %1814 = vmatmul.msk.f32.gmra.mxu2 %vm259_vm0, %v55_v41  ;;  %1821 = vmatmul.msk.f32.gmra.mxu3 %vm259_vm0, %v62_v42 }
  0x34   :  { %201 = vperm.xlu2 %2156, %v87_v43   ;;  %131 = vperm.xlu0 %2154, %v73_v44   ;;  %v570_v43 = vld [vmem:[%s3376_s4 + $0xa8] sm:$0xff] }
  0x35   :  { %136 = vperm.xlu1 %2155, %v74_v45   ;;  %v550_v44 = vld [vmem:[%s3376_s4 + $0x8] sm:$0xff] }
  0x37   :  { %1800 = vmatmul.msk.f32.gmra.mxu0 %vm259_vm0, %v41_v46 }
  0x38   :  { %1815 = vmatmul.msk.f32.gmra.mxu2 %vm259_vm0, %v56_v47  ;;  %1822 = vmatmul.msk.f32.gmra.mxu3 %vm259_vm0, %v63_v48  ;;  %v569_v47 = vld [vmem:[%s3376_s4 + $0xa0] sm:$0xff] }
  0x3c   :  { %206 = vperm.xlu0 %2154, %v88_v49   ;;  %126 = vperm.xlu2 %2156, %v72_v50  }
  0x3d   :  { %121 = vperm.xlu1 %2155, %v71_v51  }
  0x3f   :  { %1801 = vmatmul.msk.f32.gmra.mxu0 %vm259_vm0, %v42_v52 }
  0x40   :  { %1823 = vmatmul.msk.f32.gmra.mxu3 %vm259_vm0, %v64_v53 }
  0x44   :  { %191 = vperm.xlu0 %2154, %v85_v54   ;;  %111 = vperm.xlu2 %2156, %v69_v55  }
  0x45   :  { %196 = vperm.xlu1 %2155, %v86_v56  }
  0x47   :  { %1802 = vmatmul.msk.f32.gmra.mxu0 %vm259_vm0, %v43_v57 }
  0x48   :  { %1824 = vmatmul.msk.f32.gmra.mxu3 %vm259_vm0, %v65_v58  ;;  %v565_v58 = vld [vmem:[%s3376_s4 + $0x80] sm:$0xff] }
  0x4c   :  { %116 = vperm.xlu0 %2154, %v70_v59   ;;  %186 = vperm.xlu2 %2156, %v84_v60   ;;  %v567_v59 = vld [vmem:[%s3376_s4 + $0x90] sm:$0xff] }
  0x4d   :  { %181 = vperm.xlu1 %2155, %v83_v61  }
  0x4f   :  { %1803 = vmatmul.msk.f32.gmra.mxu0 %vm259_vm0, %v44_v62 }
  0x50   :  { %1825 = vmatmul.msk.f32.gmra.mxu3 %vm259_vm0, %v66_v63  ;;  %v568_v63 = vld [vmem:[%s3376_s4 + $0x98] sm:$0xff] }
  0x54   :  { %653 = vperm.xlu2 %2156, %v563_v0   ;;  %101 = vperm.xlu0 %2154, %v67_v1  }
  0x55   :  { %106 = vperm.xlu1 %2155, %v68_v2  }
  0x57   :  { %1804 = vmatmul.msk.f32.gmra.mxu0 %vm259_vm0, %v45_v3 }
  0x5c   :  { %648 = vperm.xlu2 %2156, %v562_v4   ;;  %658 = vperm.xlu0 %2154, %v564_v5  }
  0x5d   :  { %643 = vperm.xlu1 %2155, %v561_v6  }
  0x5e   :  { %v2543_v34 = vpop.permute.xlu2 %241 }
  0x64   :  { %733 = vperm.xlu2 %2156, %v579_v7   ;;  %633 = vperm.xlu0 %2154, %v559_v8   ;;  %v1190_v7 = vld [vmem:[%s3378_s6 + $0xf8] sm:$0xff]  ;;  %v566_v8 = vld [vmem:[%s3376_s4 + $0x88] sm:$0xff] }
  0x65   :  { %638 = vperm.xlu1 %2155, %v560_v9   ;;  %v1189_v9 = vld [vmem:[%s3378_s6 + $0xf0] sm:$0xff] }
  0x66   :  { %v2564_v45 = vpop.permute.xlu2 %246 }
  0x6c   :  { %628 = vperm.xlu2 %2156, %v558_v10   ;;  %738 = vperm.xlu0 %2154, %v580_v11  }
  0x6d   :  { %623 = vperm.xlu1 %2155, %v557_v12  }
  0x6e   :  { %v2588_v1 = vpop.permute.xlu2 %231 }
  0x74   :  { %613 = vperm.xlu2 %2156, %v555_v13   ;;  %723 = vperm.xlu0 %2154, %v577_v14  }
  0x75   :  { %728 = vperm.xlu1 %2155, %v578_v15  }
  0x76   :  { %v2513_v19 = vpop.permute.xlu0 %251  ;;  %v157_v12 = vpop.permute.xlu2 %156 }
  0x77   :  { %v172_v20 = vpop.permute.xlu1 %171 }
  0x7c   :  { %718 = vperm.xlu2 %2156, %v576_v16   ;;  %618 = vperm.xlu0 %2154, %v556_v17   ;;  %v1173_v16 = vld [vmem:[%s3378_s6 + $0x70] sm:$0xff]  ;;  %v1187_v17 = vld [vmem:[%s3378_s6 + $0xe0] sm:$0xff] }
  0x7d   :  { %713 = vperm.xlu1 %2155, %v575_v18   ;;  %v1188_v18 = vld [vmem:[%s3378_s6 + $0xe8] sm:$0xff] }
  0x7e   :  { %v2526_v25 = vpop.permute.xlu0 %256 }
  0x7f   :  { %v177_v27 = vpop.permute.xlu1 %176 }
  0x84   :  { %v2524_v24 = vpop.f32.mrf.mxu0  ;;  %703 = vperm.xlu2 %2156, %v573_v21   ;;  %603 = vperm.xlu0 %2154, %v553_v22   ;;  %v142_v22 = vpop.permute.xlu2 %141 }
  0x85   :  { %608 = vperm.xlu1 %2155, %v554_v23  }
  0x86   :  { %v162_v35 = vpop.permute.xlu0 %161 }
  0x87   :  { %v2528_v26 = vpop.f32.mrf.mxu1  ;;  %v167_v38 = vpop.permute.xlu1 %166 }
  0x8b   :  { %v2539_v31 = vpop.f32.mrf.mxu3  ;;  %v418_v46 = vpop.f32.mrf.mxu2 }
  0x8c   :  { %v2541_v32 = vpop.f32.mrf.mxu0  ;;  %598 = vperm.xlu2 %2156, %v552_v28   ;;  %708 = vperm.xlu0 %2154, %v574_v29   ;;  %v419_v50 = vadd.f32 %v418_v46, %v177_v27  ;;  %v1186_v28 = vld [vmem:[%s3378_s6 + $0xd8] sm:$0xff] }
  0x8d   :  { %593 = vperm.xlu1 %2155, %v551_v30   ;;  %v1174_v29 = vld [vmem:[%s3378_s6 + $0x78] sm:$0xff] }
  0x8e   :  { %v2569_v48 = vpop.permute.xlu0 %236  ;;  %v484_v56 = vmax.f32 %v419_v50, 0.0 }
  0x8f   :  { %v409_v33 = vpop.f32.mrf.mxu1  ;;  %v2573_v51 = vpop.permute.xlu1 %151 }
  0x90   :  { %v410_v53 = vadd.f32 %v409_v33, %v162_v35  ;;  %v1185_v33 = vld [vmem:[%s3378_s6 + $0xd0] sm:$0xff] }
  0x92   :  { %v481_v60 = vmax.f32 %v410_v53, 0.0  ;;  %v1170_v53 = vld [vmem:[%s3378_s6 + $0x58] sm:$0xff] }
  0x93   :  { %v2554_v40 = vpop.f32.mrf.mxu3  ;;  %v2609_v13 = vpop.f32.mrf.mxu2 }
  0x94   :  { %v2556_v41 = vpop.f32.mrf.mxu0  ;;  %583 = vperm.xlu2 %2156, %v549_v36   ;;  %693 = vperm.xlu0 %2154, %v571_v37   ;;  %v1183_v37 = vld [vmem:[%s3378_s6 + $0xc0] sm:$0xff] }
  0x95   :  { %698 = vperm.xlu1 %2155, %v572_v39   ;;  %v2645_v39 = vpop.permute.xlu2 %216 }
  0x96   :  { %v2592_v4 = vpop.permute.xlu0 %221 }
  0x97   :  { %v412_v42 = vpop.f32.mrf.mxu1  ;;  %v2594_v5 = vpop.permute.xlu1 %226 }
  0x98   :  { %v413_v54 = vadd.f32 %v412_v42, %v167_v38  ;;  %v1171_v38 = vld [vmem:[%s3378_s6 + $0x60] sm:$0xff] }
  0x9a   :  { %v482_v61 = vmax.f32 %v413_v54, 0.0  ;;  %v1184_v54 = vld [vmem:[%s3378_s6 + $0xc8] sm:$0xff] }
  0x9b   :  { %v2571_v49 = vpop.f32.mrf.mxu3  ;;  %v2626_v23 = vpop.f32.mrf.mxu2 }
  0x9c   :  { %v2575_v52 = vpop.f32.mrf.mxu0  ;;  %688 = vperm.xlu2 %2156, %v570_v43   ;;  %588 = vperm.xlu0 %2154, %v550_v44   ;;  %v507_v6 = vpack.c.bf16 %v482_v61, %v481_v60  ;;  %v1172_v43 = vld [vmem:[%s3378_s6 + $0x68] sm:$0xff] }
  0x9d   :  { %683 = vperm.xlu1 %2155, %v569_v47  }
  0x9e   :  { %v147_v14 = vpop.permute.xlu0 %146 }
  0x9f   :  { %v415_v55 = vpop.f32.mrf.mxu1  ;;  %v2611_v15 = vpop.permute.xlu1 %211 }
  0xa0   :  { %v416_v57 = vadd.f32 %v415_v55, %v172_v20  ;;  %v1169_v55 = vld [vmem:[%s3378_s6 + $0x50] sm:$0xff] }
  0xa2   :  { %v483_v62 = vmax.f32 %v416_v57, 0.0  ;;  %v2663_v57 = vpop.permute.xlu2 %201 }
  0xa3   :  { %v2586_v0 = vpop.f32.mrf.mxu3  ;;  %v2647_v42 = vpop.f32.mrf.mxu2 }
  0xa4   :  { %v2590_v2 = vpop.f32.mrf.mxu0  ;;  %663 = vperm.xlu2 %2156, %v565_v58   ;;  %673 = vperm.xlu0 %2154, %v567_v59   ;;  %v508_v3 = vpack.c.bf16 %v484_v56, %v483_v62  ;;  %v1167_v62 = vld [vmem:[%s3378_s6 + $0x40] sm:$0xff] }
  0xa5   :  { %678 = vperm.xlu1 %2155, %v568_v63   ;;  %v1181_v63 = vld [vmem:[%s3378_s6 + $0xb0] sm:$0xff] }
  0xa6   :  { %901 = vmatpush.bf16.msrb.mxu1 %v508_v3  ;;  %v2628_v27 = vpop.permute.xlu0 %131 }
  0xa7   :  { %v137_v30 = vpop.permute.xlu1 %136 }
  0xaa   :  { %902 = vmatpush.bf16.msrb.mxu1 %v507_v6  ;;  %v1182_v6 = vld [vmem:[%s3378_s6 + $0xb8] sm:$0xff] }
  0xab   :  { %v2605_v10 = vpop.f32.mrf.mxu3  ;;  %v2665_v59 = vpop.f32.mrf.mxu2 }
  0xac   :  { %v2607_v11 = vpop.f32.mrf.mxu0  ;;  %1348 = vperm.xlu2 %2156, %v1190_v7   ;;  %668 = vperm.xlu0 %2154, %v566_v8   ;;  %v407_v7 = vadd.f32 %v2528_v26, %v157_v12 }
  0xad   :  { %1343 = vperm.xlu1 %2155, %v1189_v9  }
  0xae   :  { %v2652_v44 = vpop.permute.xlu0 %206 }
  0xaf   :  { %v122_v47 = vpop.permute.xlu1 %121 }
  0xb3   :  { %v2622_v20 = vpop.f32.mrf.mxu3 }
  0xb4   :  { %v2624_v21 = vpop.f32.mrf.mxu0  ;;  %1263 = vperm.xlu2 %2156, %v1173_v16   ;;  %1333 = vperm.xlu0 %2154, %v1187_v17  }
  0xb5   :  { %1338 = vperm.xlu1 %2155, %v1188_v18  }
  0xb6   :  { %v2667_v60 = vpop.permute.xlu0 %191 }
  0xb7   :  { %v2669_v61 = vpop.permute.xlu1 %196 }
  0xbb   :  { %v457_v35 = vpop.f32.mrf.mxu3 }
  0xbc   :  { %v394_v36 = vpop.f32.mrf.mxu0  ;;  %1328 = vperm.xlu2 %2156, %v1186_v28   ;;  %1268 = vperm.xlu0 %2154, %v1174_v29   ;;  %v127_v29 = vpop.permute.xlu2 %126 }
  0xbd   :  { %1323 = vperm.xlu1 %2155, %v1185_v33  }
  0xc3   :  { %v460_v46 = vpop.f32.mrf.mxu3 }
  0xc4   :  { %v397_v50 = vpop.f32.mrf.mxu0  ;;  %1313 = vperm.xlu2 %2156, %v1183_v37   ;;  %1253 = vperm.xlu0 %2154, %v1171_v38   ;;  %v461_v9 = vadd.f32 %v460_v46, %v2564_v45  ;;  %v480_v38 = vmax.f32 %v407_v7, 0.0  ;;  %v2690_v45 = vpop.permute.xlu1 %181 }
  0xc5   :  { %1258 = vperm.xlu1 %2155, %v1172_v43   ;;  %v2686_v43 = vpop.f32.mrf.mxu2  ;;  %v398_v26 = vadd.f32 %v397_v50, %v142_v22  ;;  %v117_v46 = vpop.permute.xlu0 %116  ;;  %v1168_v22 = vld [vmem:[%s3378_s6 + $0x48] sm:$0xff]  ;;  %v449_v50 = vadd.f32 %v2586_v0, %v2594_v5  ;;  %v440_v0 = vadd.f32 %v2539_v31, %v2611_v15 }
  0xc6   :  { %v112_v5 = vpop.permute.xlu2 %111 }
  0xcb   :  { %v463_v56 = vpop.f32.mrf.mxu3 }
  0xcc   :  { %v400_v58 = vpop.f32.mrf.mxu0  ;;  %1248 = vperm.xlu2 %2156, %v1170_v53   ;;  %1318 = vperm.xlu0 %2154, %v1184_v54   ;;  %v464_v3 = vadd.f32 %v463_v56, %v2513_v19  ;;  %v458_v19 = vadd.f32 %v457_v35, %v2543_v34  ;;  %v1180_v34 = vld [vmem:[%s3378_s6 + $0xa8] sm:$0xff]  ;;  %v452_v35 = vadd.f32 %v2605_v10, %v2588_v1  ;;  %v107_v15 = vpop.permute.xlu1 %106 }
  0xcd   :  { %1243 = vperm.xlu1 %2155, %v1169_v55   ;;  %v401_v18 = vadd.f32 %v400_v58, %v147_v14  ;;  %v498_v14 = vmax.f32 %v461_v9, 0.0  ;;  %v386_v1 = vadd.f32 %v2590_v2, %v122_v47  ;;  %v436_v2 = vpop.f32.mrf.mxu2  ;;  %v383_v47 = vadd.f32 %v2575_v52, %v117_v46  ;;  %v1166_v52 = vld [vmem:[%s3378_s6 + $0x38] sm:$0xff] }
  0xce   :  { %v499_v33 = vmax.f32 %v464_v3, 0.0  ;;  %v495_v3 = vmax.f32 %v452_v35, 0.0 }
  0xcf   :  { %v478_v54 = vmax.f32 %v401_v18, 0.0 }
  0xd3   :  { %v466_v8 = vpop.f32.mrf.mxu3 }
  0xd4   :  { %v467_v16 = vadd.f32 %v466_v8, %v2526_v25  ;;  %v403_v17 = vpop.f32.mrf.mxu0  ;;  %1233 = vperm.xlu2 %2156, %v1167_v62   ;;  %1303 = vperm.xlu0 %2154, %v1181_v63   ;;  %v455_v25 = vadd.f32 %v2622_v20, %v2569_v48  ;;  %v497_v48 = vmax.f32 %v458_v19, 0.0  ;;  %v1179_v20 = vld [vmem:[%s3378_s6 + $0xa0] sm:$0xff]  ;;  %v446_v63 = vadd.f32 %v2571_v49, %v2592_v4  ;;  %v1177_v49 = vld [vmem:[%s3378_s6 + $0x90] sm:$0xff] }
  0xd5   :  { %v404_v28 = vadd.f32 %v403_v17, %v2573_v51  ;;  %1308 = vperm.xlu1 %2155, %v1182_v6   ;;  %v395_v51 = vadd.f32 %v394_v36, %v137_v30  ;;  %v392_v30 = vadd.f32 %v2624_v21, %v2628_v27  ;;  %v477_v36 = vmax.f32 %v398_v26, 0.0  ;;  %v1165_v4 = vld [vmem:[%s3378_s6 + $0x30] sm:$0xff] }
  0xd6   :  { %v500_v37 = vmax.f32 %v467_v16, 0.0  ;;  %v496_v56 = vmax.f32 %v455_v25, 0.0  ;;  %v515_v58 = vpack.c.bf16 %v498_v14, %v497_v48  ;;  %v389_v21 = vadd.f32 %v2607_v11, %v127_v29  ;;  %v102_v16 = vpop.permute.xlu0 %101 }
  0xd7   :  { %v479_v12 = vmax.f32 %v404_v28, 0.0  ;;  %v476_v10 = vmax.f32 %v395_v51, 0.0  ;;  %v505_v62 = vpack.c.bf16 %v478_v54, %v477_v36  ;;  %v475_v27 = vmax.f32 %v392_v30, 0.0  ;;  %v1161_v36 = vld [vmem:[%s3378_s6 + $0x10] sm:$0xff] }
  0xd8   :  { %v516_v53 = vpack.c.bf16 %v500_v37, %v499_v33  ;;  %v494_v6 = vmax.f32 %v449_v50, 0.0  ;;  %v514_v7 = vpack.c.bf16 %v496_v56, %v495_v3  ;;  %v473_v8 = vmax.f32 %v386_v1, 0.0  ;;  %v2082_v50 = vld [vmem:[%s3375_s3 + $0x4] sm:$0xf]  ;;  %v1830_v56 = vld [vmem:[%s3375_s3 + $0x8] sm:$0xf0] }
  0xd9   :  { %v506_v55 = vpack.c.bf16 %v480_v38, %v479_v12  ;;  %v504_v9 = vpack.c.bf16 %v476_v10, %v475_v27  ;;  %v443_v11 = vadd.f32 %v2554_v40, %v2645_v39  ;;  %v493_v31 = vmax.f32 %v446_v63, 0.0  ;;  %v1160_v10 = vld [vmem:[%s3378_s6 + $0x8] sm:$0xff]  ;;  %v1159_v63 = vld [vmem:[%s3378_s6] sm:$0xff]  ;;  %v1836_v3 = vld [vmem:[%s3375_s3 + $0x10] sm:$0xf] }
  0xda   :  { %990 = vmatpush.bf16.msrb.mxu2 %v516_v53  ;;  %v380_v17 = vadd.f32 %v2556_v41, %v112_v5  ;;  %v474_v18 = vmax.f32 %v389_v21, 0.0  ;;  %v491_v28 = vmax.f32 %v440_v0, 0.0  ;;  %v437_v29 = vadd.f32 %v436_v2, %v2652_v44  ;;  %v1164_v53 = vld [vmem:[%s3378_s6 + $0x28] sm:$0xff]  ;;  %v2085_v21 = vld [vmem:[%s3375_s3 + $0x14] sm:$0xf0]  ;;  %v1738_v0 = vld [vmem:[%s3380_s8] sm:$0xff] }
  0xdb   :  { %903 = vmatpush.bf16.msrb.mxu1 %v506_v55  ;;  %v513_v19 = vpack.c.bf16 %v494_v6, %v493_v31  ;;  %v472_v33 = vmax.f32 %v383_v47, 0.0  ;;  %v377_v40 = vadd.f32 %v2541_v32, %v107_v15  ;;  %v374_v39 = vadd.f32 %v2524_v24, %v102_v16  ;;  %v2084_v5 = vld [vmem:[%s3375_s3 + $0x14] sm:$0xf]  ;;  %v1838_v6 = vld [vmem:[%s3375_s3 + $0x18] sm:$0xf0] }
  0xdc   :  { %1298 = vperm.xlu2 %2156, %v1180_v34   ;;  %1238 = vperm.xlu0 %2154, %v1168_v22   ;;  %v503_v37 = vpack.c.bf16 %v474_v18, %v473_v8  ;;  %v492_v38 = vmax.f32 %v443_v11, 0.0  ;;  %v434_v26 = vadd.f32 %v2686_v43, %v2663_v57  ;;  %v471_v41 = vmax.f32 %v380_v17, 0.0  ;;  %v1178_v57 = vld [vmem:[%s3378_s6 + $0x98] sm:$0xff]  ;;  %v1844_v8 = vld [vmem:[%s3375_s3 + $0x20] sm:$0xf] }
  0xdd   :  { %1293 = vperm.xlu1 %2155, %v1179_v20   ;;  %v428_v44 = vadd.f32 %v2647_v42, %v2667_v60  ;;  %v431_v12 = vadd.f32 %v2665_v59, %v2669_v61  ;;  %v490_v25 = vmax.f32 %v437_v29, 0.0  ;;  %v470_v32 = vmax.f32 %v377_v40, 0.0  ;;  %v1163_v42 = vld [vmem:[%s3378_s6 + $0x20] sm:$0xff]  ;;  %v187_v59 = vpop.permute.xlu2 %186  ;;  %v2083_v61 = vld [vmem:[%s3375_s3 + $0x4] sm:$0xf0] }
  0xde   :  { %991 = vmatpush.bf16.msrb.mxu2 %v515_v58  ;;  %v512_v46 = vpack.c.bf16 %v492_v38, %v491_v28  ;;  %v469_v14 = vmax.f32 %v374_v39, 0.0  ;;  %v502_v24 = vpack.c.bf16 %v472_v33, %v471_v41  ;;  %v489_v43 = vmax.f32 %v434_v26, 0.0  ;;  %v1828_v60 = vld [vmem:[%s3375_s3] sm:$0xf]  ;;  %v2087_v2 = vld [vmem:[%s3375_s3 + $0x24] sm:$0xf0]  ;;  %v2824_v33 = vpop.permute.xlu0 %658 }
  0xdf   :  { %904 = vmatpush.bf16.msrb.mxu1 %v505_v62  ;;  %v487_v51 = vmax.f32 %v428_v44, 0.0  ;;  %v488_v54 = vmax.f32 %v431_v12, 0.0  ;;  %v422_v55 = vadd.f32 %v2609_v13, %v2690_v45  ;;  %v425_v35 = vadd.f32 %v2626_v23, %v187_v59  ;;  %v1175_v13 = vld [vmem:[%s3378_s6 + $0x80] sm:$0xff]  ;;  %v1176_v23 = vld [vmem:[%s3378_s6 + $0x88] sm:$0xff]  ;;  %v1162_v62 = vld [vmem:[%s3378_s6 + $0x18] sm:$0xff] }
  0xe0   :  { %v511_v34 = vpack.c.bf16 %v490_v25, %v489_v43  ;;  %v501_v22 = vpack.c.bf16 %v470_v32, %v469_v14  ;;  %v1829_v48 = vor.u32 %v2083_v61, %v1828_v60  ;;  %v1833_v1 = vor.u32 %v2082_v50, %v1830_v56  ;;  %v1852_v11 = vld [vmem:[%s3375_s3 + $0x30] sm:$0xf]  ;;  %v2089_v31 = vld [vmem:[%s3375_s3 + $0x34] sm:$0xf0]  ;;  %v2088_v16 = vld [vmem:[%s3375_s3 + $0x34] sm:$0xf] }
  0xe1   :  { %v485_v20 = vmax.f32 %v422_v55, 0.0  ;;  %v510_v30 = vpack.c.bf16 %v488_v54, %v487_v51  ;;  %v486_v45 = vmax.f32 %v425_v35, 0.0  ;;  %v1837_v27 = vor.u32 %v2085_v21, %v1836_v3  ;;  %v1860_v28 = vld [vmem:[%s3375_s3 + $0x40] sm:$0xf]  ;;  %v2091_v29 = vld [vmem:[%s3375_s3 + $0x44] sm:$0xf0] }
  0xe2   :  { %992 = vmatpush.bf16.msrb.mxu2 %v514_v7  ;;  %v1841_v7 = vor.u32 %v2084_v5, %v1838_v6  ;;  %v1845_v47 = vor.u32 %v2087_v2, %v1844_v8  ;;  %v1853_v15 = vor.u32 %v2089_v31, %v1852_v11  ;;  %v2090_v40 = vld [vmem:[%s3375_s3 + $0x44] sm:$0xf]  ;;  %v1862_v39 = vld [vmem:[%s3375_s3 + $0x48] sm:$0xf0]  ;;  %v1868_v26 = vld [vmem:[%s3375_s3 + $0x50] sm:$0xf] }
  0xe3   :  { %905 = vmatpush.bf16.msrb.mxu1 %v504_v9  ;;  %v509_v58 = vpack.c.bf16 %v486_v45, %v485_v20  ;;  %v2086_v9 = vld [vmem:[%s3375_s3 + $0x24] sm:$0xf]  ;;  %v1865_v38 = vor.u32 %v2090_v40, %v1862_v39  ;;  %v2093_v41 = vld [vmem:[%s3375_s3 + $0x54] sm:$0xf0]  ;;  %v1870_v32 = vld [vmem:[%s3375_s3 + $0x58] sm:$0xf0] }
  0xe4   :  { %1283 = vperm.xlu2 %2156, %v1177_v49   ;;  %1223 = vperm.xlu0 %2154, %v1165_v4   ;;  %v1846_v49 = vld [vmem:[%s3375_s3 + $0x28] sm:$0xf0]  ;;  %v1869_v25 = vor.u32 %v2093_v41, %v1868_v26  ;;  %v2095_v43 = vld [vmem:[%s3375_s3 + $0x64] sm:$0xf0]  ;;  %v2094_v51 = vld [vmem:[%s3375_s3 + $0x64] sm:$0xf] }
  0xe5   :  { %1228 = vperm.xlu1 %2155, %v1166_v52   ;;  %v1849_v4 = vor.u32 %v2086_v9, %v1846_v49  ;;  %v1854_v52 = vld [vmem:[%s3375_s3 + $0x38] sm:$0xf0]  ;;  %v2816_v18 = vpop.permute.xlu2 %653  ;;  %v1878_v54 = vld [vmem:[%s3375_s3 + $0x68] sm:$0xf0]  ;;  %v1884_v35 = vld [vmem:[%s3375_s3 + $0x70] sm:$0xf] }
  0xe6   :  { %993 = vmatpush.bf16.msrb.mxu2 %v513_v19  ;;  %v1857_v17 = vor.u32 %v2088_v16, %v1854_v52  ;;  %v1861_v19 = vor.u32 %v2091_v29, %v1860_v28  ;;  %v2840_v44 = vpop.permute.xlu0 %633  ;;  %v1881_v55 = vor.u32 %v2094_v51, %v1878_v54  ;;  %v1886_v45 = vld [vmem:[%s3375_s3 + $0x78] sm:$0xf0]  ;;  %v1900_v9 = vld [vmem:[%s3375_s3 + $0x90] sm:$0xf]  ;;  %v2101_v49 = vld [vmem:[%s3375_s3 + $0x94] sm:$0xf0] }
  0xe7   :  { %906 = vmatpush.bf16.msrb.mxu1 %v503_v37  ;;  %v1901_v31 = vor.u32 %v2101_v49, %v1900_v9  ;;  %v1902_v28 = vld [vmem:[%s3375_s3 + $0x98] sm:$0xf0] }
  0xea   :  { %994 = vmatpush.bf16.msrb.mxu2 %v512_v46  ;;  %v2092_v46 = vld [vmem:[%s3375_s3 + $0x54] sm:$0xf] }
  0xeb   :  { %907 = vmatpush.bf16.msrb.mxu1 %v502_v24  ;;  %v1873_v14 = vor.u32 %v2092_v46, %v1870_v32 }
  0xec   :  { %1218 = vperm.xlu2 %2156, %v1164_v53   ;;  %1288 = vperm.xlu0 %2154, %v1178_v57   ;;  %v1876_v57 = vld [vmem:[%s3375_s3 + $0x60] sm:$0xf] }
  0xed   :  { %1213 = vperm.xlu1 %2155, %v1163_v42   ;;  %v2832_v37 = vpop.permute.xlu2 %648  ;;  %v2860_v42 = vpop.permute.xlu1 %643  ;;  %v1877_v59 = vor.u32 %v2095_v43, %v1876_v57  ;;  %v2103_v57 = vld [vmem:[%s3375_s3 + $0xa4] sm:$0xf0] }
  0xee   :  { %995 = vmatpush.bf16.msrb.mxu2 %v511_v34  ;;  %v2850_v24 = vpop.permute.xlu0 %738 }
  0xef   :  { %908 = vmatpush.bf16.msrb.mxu1 %v501_v22 }
  0xf2   :  { %996 = vmatpush.bf16.msrb.mxu2 %v510_v30  ;;  %909 = vmatmul.bf16.vlgmr.msrb.gmra.mxu1 %v1829_v48  ;;  %v2097_v48 = vld [vmem:[%s3375_s3 + $0x74] sm:$0xf0] }
  0xf3   :  { %v1885_v30 = vor.u32 %v2097_v48, %v1884_v35  ;;  %v1910_v35 = vld [vmem:[%s3375_s3 + $0xa8] sm:$0xf0] }
  0xf4   :  { %1203 = vperm.xlu2 %2156, %v1161_v36   ;;  %1273 = vperm.xlu0 %2154, %v1175_v13   ;;  %v2096_v13 = vld [vmem:[%s3375_s3 + $0x74] sm:$0xf] }
  0xf5   :  { %1278 = vperm.xlu1 %2155, %v1176_v23   ;;  %v2842_v12 = vpop.permute.xlu2 %733  ;;  %v2872_v34 = vpop.permute.xlu1 %638  ;;  %v1889_v50 = vor.u32 %v2096_v13, %v1886_v45 }
  0xf6   :  { %997 = vmatpush.bf16.msrb.mxu2 %v509_v58  ;;  %v2862_v60 = vpop.permute.xlu0 %723  ;;  %v1892_v58 = vld [vmem:[%s3375_s3 + $0x80] sm:$0xf] }
  0xf9   :  { %998 = vmatmul.bf16.vlgmr.msrb.gmra.mxu2 %v1833_v1  ;;  %v2099_v1 = vld [vmem:[%s3375_s3 + $0x84] sm:$0xf0] }
  0xfc   :  { %1198 = vperm.xlu2 %2156, %v1160_v10   ;;  %1208 = vperm.xlu0 %2154, %v1162_v62  }
  0xfd   :  { %1193 = vperm.xlu1 %2155, %v1159_v63   ;;  %v2852_v53 = vpop.permute.xlu2 %628  ;;  %v2884_v36 = vpop.permute.xlu1 %623  ;;  %v1893_v63 = vor.u32 %v2099_v1, %v1892_v58 }
  0xfe   :  { %v2874_v22 = vpop.permute.xlu0 %618 }
 0x102   :  { %914 = vmatmul.bf16.gmra.mxu1 %v1837_v27  ;;  %v2098_v27 = vld [vmem:[%s3375_s3 + $0x84] sm:$0xf] }
 0x104   :  { %1741 = vperm.xlu0 %2154, %v1738_v0   ;;  %v1894_v0 = vld [vmem:[%s3375_s3 + $0x88] sm:$0xf0] }
 0x105   :  { %v2864_v61 = vpop.permute.xlu2 %613  ;;  %v2900_v10 = vpop.permute.xlu1 %728  ;;  %v1897_v5 = vor.u32 %v2098_v27, %v1894_v0  ;;  %v1916_v27 = vld [vmem:[%s3375_s3 + $0xb0] sm:$0xf]  ;;  %v2105_v0 = vld [vmem:[%s3375_s3 + $0xb4] sm:$0xf0] }
 0x106   :  { %v604_v23 = vpop.permute.xlu0 %603 }
 0x109   :  { %1003 = vmatmul.bf16.gmra.mxu2 %v1841_v7 }
 0x10d   :  { %v2882_v20 = vpop.permute.xlu2 %718  ;;  %v2910_v6 = vpop.permute.xlu1 %713 }
 0x10e   :  { %v2902_v62 = vpop.permute.xlu0 %708 }
 0x112   :  { %919 = vmatmul.bf16.gmra.mxu1 %v1845_v47 }
 0x115   :  { %v2892_v56 = vpop.permute.xlu2 %703  ;;  %v609_v16 = vpop.permute.xlu1 %608 }
 0x116   :  { %v2912_v8 = vpop.permute.xlu0 %693 }
 0x119   :  { %1008 = vmatmul.bf16.gmra.mxu2 %v1849_v4 }
 0x11d   :  { %v599_v21 = vpop.permute.xlu2 %598  ;;  %v594_v46 = vpop.permute.xlu1 %593 }
 0x11e   :  { %v589_v52 = vpop.permute.xlu0 %588 }
 0x122   :  { %924 = vmatmul.bf16.gmra.mxu1 %v1853_v15 }
 0x125   :  { %v584_v2 = vpop.permute.xlu2 %583 }
 0x129   :  { %1013 = vmatmul.bf16.gmra.mxu2 %v1857_v17  ;;  %v2100_v17 = vld [vmem:[%s3375_s3 + $0x94] sm:$0xf] }
 0x12a   :  { %v1905_v39 = vor.u32 %v2100_v17, %v1902_v28 }
 0x132   :  { %929 = vmatmul.bf16.gmra.mxu1 %v1861_v19 }
 0x139   :  { %1018 = vmatmul.bf16.gmra.mxu2 %v1865_v38 }
 0x142   :  { %934 = vmatmul.bf16.gmra.mxu1 %v1869_v25 }
 0x149   :  { %1023 = vmatmul.bf16.gmra.mxu2 %v1873_v14  ;;  %v1908_v14 = vld [vmem:[%s3375_s3 + $0xa0] sm:$0xf] }
 0x14a   :  { %v1909_v51 = vor.u32 %v2103_v57, %v1908_v14 }
 0x152   :  { %939 = vmatmul.bf16.gmra.mxu1 %v1877_v59 }
 0x159   :  { %1028 = vmatmul.bf16.gmra.mxu2 %v1881_v55  ;;  %v2102_v55 = vld [vmem:[%s3375_s3 + $0xa4] sm:$0xf] }
 0x15a   :  { %v1913_v45 = vor.u32 %v2102_v55, %v1910_v35  ;;  %v1932_v55 = vld [vmem:[%s3375_s3 + $0xd0] sm:$0xf] }
 0x162   :  { %944 = vmatmul.bf16.gmra.mxu1 %v1885_v30 }
 0x169   :  { %1033 = vmatmul.bf16.gmra.mxu2 %v1889_v50 }
 0x16f   :  { %v910_v3 = vpop.f32.mrf.mxu1 }
 0x170   :  { %v911_v47 = vadd.f32 %v910_v3, %v584_v2 }
 0x172   :  { %949 = vmatmul.bf16.gmra.mxu1 %v1893_v63 }
 0x177   :  { %v912_v7 = vpop.f32.mrf.mxu1 }
 0x178   :  { %v913_v29 = vadd.f32 %v912_v7, %v589_v52  ;;  %v1917_v7 = vor.u32 %v2105_v0, %v1916_v27  ;;  %v2111_v27 = vld [vmem:[%s3375_s3 + $0xe4] sm:$0xf0] }
 0x179   :  { %1038 = vmatmul.bf16.gmra.mxu2 %v1897_v5 }
 0x17c   :  { %v999_v4 = vpop.f32.mrf.mxu2 }
 0x17d   :  { %v1000_v11 = vadd.f32 %v999_v4, %v911_v47  ;;  %v2104_v47 = vld [vmem:[%s3375_s3 + $0xb4] sm:$0xf] }
 0x17f   :  { %v915_v15 = vpop.f32.mrf.mxu1  ;;  %v1079_v38 = vmax.f32 %v1000_v11, 0.0 }
 0x180   :  { %v916_v32 = vadd.f32 %v915_v15, %v594_v46 }
 0x182   :  { %954 = vmatmul.bf16.gmra.mxu1 %v1901_v31 }
 0x184   :  { %v1001_v19 = vpop.f32.mrf.mxu2 }
 0x185   :  { %v1002_v40 = vadd.f32 %v1001_v19, %v913_v29  ;;  %v1924_v29 = vld [vmem:[%s3375_s3 + $0xc0] sm:$0xf]  ;;  %v2107_v19 = vld [vmem:[%s3375_s3 + $0xc4] sm:$0xf0] }
 0x187   :  { %v1080_v26 = vmax.f32 %v1002_v40, 0.0  ;;  %v917_v41 = vpop.f32.mrf.mxu1 }
 0x188   :  { %v918_v48 = vadd.f32 %v917_v41, %v599_v21 }
 0x189   :  { %1043 = vmatmul.bf16.gmra.mxu2 %v1905_v39  ;;  %v2926_v25 = vpack.c.bf16 %v1080_v26, %v1079_v38  ;;  %v1925_v39 = vor.u32 %v2107_v19, %v1924_v29  ;;  %v2106_v26 = vld [vmem:[%s3375_s3 + $0xc4] sm:$0xf] }
 0x18c   :  { %v1004_v43 = vpop.f32.mrf.mxu2 }
 0x18d   :  { %v1005_v59 = vadd.f32 %v1004_v43, %v916_v32 }
 0x18f   :  { %v920_v54 = vpop.f32.mrf.mxu1  ;;  %v1081_v50 = vmax.f32 %v1005_v59, 0.0 }
 0x190   :  { %v921_v3 = vadd.f32 %v920_v54, %v604_v23  ;;  %v1918_v23 = vld [vmem:[%s3375_s3 + $0xb8] sm:$0xf0] }
 0x191   :  { %v1921_v11 = vor.u32 %v2104_v47, %v1918_v23 }
 0x192   :  { %959 = vmatmul.bf16.gmra.mxu1 %v1909_v51 }
 0x194   :  { %v1006_v30 = vpop.f32.mrf.mxu2 }
 0x195   :  { %v1007_v13 = vadd.f32 %v1006_v30, %v918_v48 }
 0x197   :  { %v1082_v58 = vmax.f32 %v1007_v13, 0.0  ;;  %v922_v1 = vpop.f32.mrf.mxu1 }
 0x198   :  { %v923_v9 = vadd.f32 %v922_v1, %v609_v16 }
 0x199   :  { %1048 = vmatmul.bf16.gmra.mxu2 %v1913_v45  ;;  %v2940_v63 = vpack.c.bf16 %v1082_v58, %v1081_v50  ;;  %v2108_v45 = vld [vmem:[%s3375_s3 + $0xd4] sm:$0xf] }
 0x19c   :  { %v1009_v5 = vpop.f32.mrf.mxu2 }
 0x19d   :  { %v1010_v21 = vadd.f32 %v1009_v5, %v921_v3  ;;  %v1940_v3 = vld [vmem:[%s3375_s3 + $0xe0] sm:$0xf] }
 0x19e   :  { %v1941_v5 = vor.u32 %v2111_v27, %v1940_v3 }
 0x19f   :  { %v925_v2 = vpop.f32.mrf.mxu1  ;;  %v1083_v31 = vmax.f32 %v1010_v21, 0.0 }
 0x1a0   :  { %v926_v28 = vadd.f32 %v925_v2, %v2864_v61  ;;  %v1926_v61 = vld [vmem:[%s3375_s3 + $0xc8] sm:$0xf0] }
 0x1a1   :  { %v1929_v14 = vor.u32 %v2106_v26, %v1926_v61  ;;  %v1942_v2 = vld [vmem:[%s3375_s3 + $0xe8] sm:$0xf0] }
 0x1a2   :  { %964 = vmatmul.bf16.gmra.mxu1 %v1917_v7  ;;  %v2110_v7 = vld [vmem:[%s3375_s3 + $0xe4] sm:$0xf] }
 0x1a3   :  { %v1945_v23 = vor.u32 %v2110_v7, %v1942_v2 }
 0x1a4   :  { %v1011_v49 = vpop.f32.mrf.mxu2 }
 0x1a5   :  { %v1012_v4 = vadd.f32 %v1011_v49, %v923_v9  ;;  %v1948_v49 = vld [vmem:[%s3375_s3 + $0xf0] sm:$0xf] }
 0x1a7   :  { %v1084_v15 = vmax.f32 %v1012_v4, 0.0  ;;  %v927_v52 = vpop.f32.mrf.mxu1  ;;  %v2113_v4 = vld [vmem:[%s3375_s3 + $0xf4] sm:$0xf0] }
 0x1a8   :  { %v928_v41 = vadd.f32 %v927_v52, %v2874_v22  ;;  %v2109_v22 = vld [vmem:[%s3375_s3 + $0xd4] sm:$0xf0]  ;;  %v2112_v52 = vld [vmem:[%s3375_s3 + $0xf4] sm:$0xf] }
 0x1a9   :  { %1053 = vmatmul.bf16.gmra.mxu2 %v1921_v11  ;;  %v2954_v17 = vpack.c.bf16 %v1084_v15, %v1083_v31  ;;  %v1933_v30 = vor.u32 %v2109_v22, %v1932_v55  ;;  %v1949_v31 = vor.u32 %v2113_v4, %v1948_v49 }
 0x1ac   :  { %v1014_v16 = vpop.f32.mrf.mxu2 }
 0x1ad   :  { %v1015_v40 = vadd.f32 %v1014_v16, %v926_v28  ;;  %v1950_v28 = vld [vmem:[%s3375_s3 + $0xf8] sm:$0xf0] }
 0x1ae   :  { %v1953_v19 = vor.u32 %v2112_v52, %v1950_v28 }
 0x1af   :  { %v930_v38 = vpop.f32.mrf.mxu1  ;;  %v1085_v57 = vmax.f32 %v1015_v40, 0.0 }
 0x1b0   :  { %v931_v54 = vadd.f32 %v930_v38, %v2884_v36  ;;  %v1934_v36 = vld [vmem:[%s3375_s3 + $0xd8] sm:$0xf0]  ;;  %v3013_v38 = vpop.permute.xlu2 %688 }
 0x1b1   :  { %v1937_v58 = vor.u32 %v2108_v45, %v1934_v36  ;;  %v674_v45 = vpop.permute.xlu0 %673 }
 0x1b2   :  { %969 = vmatmul.bf16.gmra.mxu1 %v1925_v39 }
 0x1b4   :  { %v1016_v46 = vpop.f32.mrf.mxu2 }
 0x1b5   :  { %v1017_v32 = vadd.f32 %v1016_v46, %v928_v41 }
 0x1b7   :  { %v1086_v43 = vmax.f32 %v1017_v32, 0.0  ;;  %v2970_v59 = vpop.f32.mrf.mxu1 }
 0x1b8   :  { %v664_v3 = vpop.permute.xlu2 %663 }
 0x1b9   :  { %1058 = vmatmul.bf16.gmra.mxu2 %v1929_v14  ;;  %v2972_v51 = vpack.c.bf16 %v1086_v43, %v1085_v57  ;;  %v669_v49 = vpop.permute.xlu0 %668 }
 0x1bc   :  { %v1019_v35 = vpop.f32.mrf.mxu2 }
 0x1bd   :  { %v2981_v48 = vadd.f32 %v1019_v35, %v931_v54 }
 0x1bf   :  { %v935_v13 = vpop.f32.mrf.mxu1  ;;  %v1087_v4 = vmax.f32 %v2981_v48, 0.0 }
 0x1c0   :  { %v936_v36 = vadd.f32 %v935_v13, %v2840_v44 }
 0x1c2   :  { %974 = vmatmul.bf16.gmra.mxu1 %v1933_v30 }
 0x1c4   :  { %v1021_v50 = vpop.f32.mrf.mxu2 }
 0x1c7   :  { %v937_v1 = vpop.f32.mrf.mxu1 }
 0x1c8   :  { %v938_v54 = vadd.f32 %v937_v1, %v2872_v34 }
 0x1c9   :  { %1063 = vmatmul.bf16.gmra.mxu2 %v1937_v58 }
 0x1cc   :  { %v1024_v0 = vpop.f32.mrf.mxu2 }
 0x1cd   :  { %v1025_v27 = vadd.f32 %v1024_v0, %v936_v36 }
 0x1cf   :  { %v940_v21 = vpop.f32.mrf.mxu1 }
 0x1d0   :  { %v941_v14 = vadd.f32 %v940_v21, %v2860_v42 }
 0x1d2   :  { %979 = vmatmul.bf16.gmra.mxu1 %v1941_v5 }
 0x1d4   :  { %v1026_v47 = vpop.f32.mrf.mxu2 }
 0x1d7   :  { %v942_v9 = vpop.f32.mrf.mxu1 }
 0x1d8   :  { %v943_v61 = vadd.f32 %v942_v9, %v2832_v37  ;;  %v1089_v9 = vmax.f32 %v1025_v27, 0.0 }
 0x1d9   :  { %1068 = vmatmul.bf16.gmra.mxu2 %v1945_v23  ;;  %v699_v23 = vpop.permute.xlu1 %698 }
 0x1dc   :  { %v1029_v11 = vpop.f32.mrf.mxu2 }
 0x1dd   :  { %v1030_v55 = vadd.f32 %v1029_v11, %v941_v14 }
 0x1df   :  { %v945_v15 = vpop.f32.mrf.mxu1  ;;  %v1091_v42 = vmax.f32 %v1030_v55, 0.0 }
 0x1e0   :  { %v946_v26 = vadd.f32 %v945_v15, %v2816_v18  ;;  %v1027_v18 = vadd.f32 %v1026_v47, %v938_v54 }
 0x1e1   :  { %v684_v52 = vpop.permute.xlu1 %683 }
 0x1e2   :  { %984 = vmatmul.bf16.gmra.mxu1 %v1949_v31  ;;  %v1090_v1 = vmax.f32 %v1027_v18, 0.0 }
 0x1e4   :  { %v1031_v29 = vpop.f32.mrf.mxu2  ;;  %v1116_v47 = vpack.c.bf16 %v1090_v1, %v1089_v9 }
 0x1e5   :  { %v1032_v57 = vadd.f32 %v1031_v29, %v943_v61  ;;  %v2115_v61 = vld [vmem:[%s3377_s5 + $0x4] sm:$0xf0] }
 0x1e7   :  { %v947_v16 = vpop.f32.mrf.mxu1  ;;  %v1092_v58 = vmax.f32 %v1032_v57, 0.0 }
 0x1e8   :  { %v948_v41 = vadd.f32 %v947_v16, %v2824_v33  ;;  %v933_v33 = vadd.f32 %v2970_v59, %v2852_v53 }
 0x1e9   :  { %1073 = vmatmul.bf16.gmra.mxu2 %v1953_v19  ;;  %v1117_v2 = vpack.c.bf16 %v1092_v58, %v1091_v42 }
 0x1ea   :  { %v1022_v34 = vadd.f32 %v1021_v50, %v933_v33 }
 0x1ec   :  { %v1034_v40 = vpop.f32.mrf.mxu2  ;;  %v1088_v13 = vmax.f32 %v1022_v34, 0.0  ;;  %v2119_v34 = vld [vmem:[%s3377_s5 + $0x24] sm:$0xf0] }
 0x1ed   :  { %v1035_v46 = vadd.f32 %v1034_v40, %v946_v26  ;;  %v679_v40 = vpop.permute.xlu1 %678  ;;  %v1956_v26 = vld [vmem:[%s3377_s5] sm:$0xf] }
 0x1ee   :  { %v1115_v0 = vpack.c.bf16 %v1088_v13, %v1087_v4 }
 0x1ef   :  { %v950_v39 = vpop.f32.mrf.mxu1  ;;  %v1093_v22 = vmax.f32 %v1035_v46, 0.0 }
 0x1f0   :  { %v951_v5 = vadd.f32 %v950_v39, %v664_v3 }
 0x1f4   :  { %v1036_v32 = vpop.f32.mrf.mxu2 }
 0x1f5   :  { %v1037_v43 = vadd.f32 %v1036_v32, %v948_v41 }
 0x1f7   :  { %v1094_v35 = vmax.f32 %v1037_v43, 0.0  ;;  %v952_v30 = vpop.f32.mrf.mxu1 }
 0x1f8   :  { %v953_v11 = vadd.f32 %v952_v30, %v669_v49  ;;  %v2117_v30 = vld [vmem:[%s3377_s5 + $0x14] sm:$0xf0] }
 0x1f9   :  { %v1118_v37 = vpack.c.bf16 %v1094_v35, %v1093_v22  ;;  %v1964_v35 = vld [vmem:[%s3377_s5 + $0x10] sm:$0xf] }
 0x1fa   :  { %v1965_v36 = vor.u32 %v2117_v30, %v1964_v35 }
 0x1fb   :  { %1511 = vmatpush.bf16.msrb.mxu3 %v1118_v37 }
 0x1fc   :  { %v1039_v21 = vpop.f32.mrf.mxu2 }
 0x1fd   :  { %v1040_v7 = vadd.f32 %v1039_v21, %v951_v5  ;;  %v1972_v21 = vld [vmem:[%s3377_s5 + $0x20] sm:$0xf] }
 0x1ff   :  { %1512 = vmatpush.bf16.msrb.mxu3 %v1117_v2  ;;  %v955_v44 = vpop.f32.mrf.mxu1  ;;  %v1095_v31 = vmax.f32 %v1040_v7, 0.0  ;;  %v1973_v2 = vor.u32 %v2119_v34, %v1972_v21 }
 0x200   :  { %v956_v29 = vadd.f32 %v955_v44, %v674_v45 }
 0x203   :  { %1513 = vmatpush.bf16.msrb.mxu3 %v1116_v47 }
 0x204   :  { %v1041_v53 = vpop.f32.mrf.mxu2 }
 0x205   :  { %v1042_v59 = vadd.f32 %v1041_v53, %v953_v11  ;;  %v1980_v11 = vld [vmem:[%s3377_s5 + $0x30] sm:$0xf]  ;;  %v2121_v53 = vld [vmem:[%s3377_s5 + $0x34] sm:$0xf0] }
 0x207   :  { %v1096_v15 = vmax.f32 %v1042_v59, 0.0  ;;  %1514 = vmatpush.bf16.msrb.mxu3 %v1115_v0  ;;  %v957_v50 = vpop.f32.mrf.mxu1  ;;  %v1981_v0 = vor.u32 %v2121_v53, %v1980_v11  ;;  %v3122_v53 = vpop.permute.xlu1 %1343 }
 0x208   :  { %v958_v39 = vadd.f32 %v957_v50, %v679_v40  ;;  %v1996_v40 = vld [vmem:[%s3377_s5 + $0x50] sm:$0xf] }
 0x209   :  { %v3024_v28 = vpack.c.bf16 %v1096_v15, %v1095_v31 }
 0x20b   :  { %1515 = vmatpush.bf16.msrb.mxu3 %v2972_v51  ;;  %v1957_v51 = vor.u32 %v2115_v61, %v1956_v26 }
 0x20c   :  { %v1044_v19 = vpop.f32.mrf.mxu2 }
 0x20d   :  { %v1045_v16 = vadd.f32 %v1044_v19, %v956_v29 }
 0x20f   :  { %1516 = vmatpush.bf16.msrb.mxu3 %v2954_v17  ;;  %v960_v48 = vpop.f32.mrf.mxu1  ;;  %v1097_v32 = vmax.f32 %v1045_v16, 0.0 }
 0x213   :  { %1517 = vmatpush.bf16.msrb.mxu3 %v2940_v63  ;;  %v961_v63 = vadd.f32 %v960_v48, %v684_v52  ;;  %v2123_v52 = vld [vmem:[%s3377_s5 + $0x44] sm:$0xf0] }
 0x214   :  { %v1046_v41 = vpop.f32.mrf.mxu2 }
 0x215   :  { %v1047_v46 = vadd.f32 %v1046_v41, %v958_v39  ;;  %v2125_v39 = vld [vmem:[%s3377_s5 + $0x54] sm:$0xf0] }
 0x216   :  { %v1997_v41 = vor.u32 %v2125_v39, %v1996_v40  ;;  %v2120_v40 = vld [vmem:[%s3377_s5 + $0x34] sm:$0xf]  ;;  %v1982_v39 = vld [vmem:[%s3377_s5 + $0x38] sm:$0xf0] }
 0x217   :  { %v1098_v14 = vmax.f32 %v1047_v46, 0.0  ;;  %1518 = vmatpush.bf16.msrb.mxu3 %v2926_v25  ;;  %v962_v17 = vpop.f32.mrf.mxu1 }
 0x218   :  { %v963_v22 = vadd.f32 %v962_v17, %v3013_v38 }
 0x219   :  { %v3036_v57 = vpack.c.bf16 %v1098_v14, %v1097_v32 }
 0x21a   :  { %1519 = vmatmul.bf16.vlgmr.msrb.gmra.mxu3 %v1957_v51 }
 0x21c   :  { %v1049_v43 = vpop.f32.mrf.mxu2 }
 0x21d   :  { %v1050_v54 = vadd.f32 %v1049_v43, %v961_v63  ;;  %v2004_v43 = vld [vmem:[%s3377_s5 + $0x60] sm:$0xf] }
 0x21f   :  { %v965_v55 = vpop.f32.mrf.mxu1  ;;  %v1099_v18 = vmax.f32 %v1050_v54, 0.0  ;;  %v2127_v54 = vld [vmem:[%s3377_s5 + $0x64] sm:$0xf0] }
 0x220   :  { %v966_v33 = vadd.f32 %v965_v55, %v2912_v8 }
 0x224   :  { %v1051_v45 = vpop.f32.mrf.mxu2 }
 0x225   :  { %v1052_v25 = vadd.f32 %v1051_v45, %v963_v22  ;;  %v2005_v45 = vor.u32 %v2127_v54, %v2004_v43  ;;  %v2139_v43 = vld [vmem:[%s3377_s5 + $0xc4] sm:$0xf0]  ;;  %v2122_v54 = vld [vmem:[%s3377_s5 + $0x44] sm:$0xf] }
 0x227   :  { %v1100_v58 = vmax.f32 %v1052_v25, 0.0  ;;  %v967_v37 = vpop.f32.mrf.mxu1 }
 0x228   :  { %v968_v5 = vadd.f32 %v967_v37, %v699_v23 }
 0x229   :  { %v3045_v3 = vpack.c.bf16 %v1100_v58, %v1099_v18 }
 0x22a   :  { %1524 = vmatmul.bf16.gmra.mxu3 %v1965_v36 }
 0x22c   :  { %v1054_v38 = vpop.f32.mrf.mxu2 }
 0x22d   :  { %v1055_v27 = vadd.f32 %v1054_v38, %v966_v33 }
 0x22f   :  { %v970_v42 = vpop.f32.mrf.mxu1  ;;  %v1101_v9 = vmax.f32 %v1055_v27, 0.0 }
 0x230   :  { %v971_v8 = vadd.f32 %v970_v42, %v2892_v56  ;;  %v1988_v56 = vld [vmem:[%s3377_s5 + $0x40] sm:$0xf] }
 0x231   :  { %v1989_v19 = vor.u32 %v2123_v52, %v1988_v56  ;;  %v3136_v52 = vpop.permute.xlu2 %1348 }
 0x234   :  { %v1056_v1 = vpop.f32.mrf.mxu2 }
 0x235   :  { %v1057_v7 = vadd.f32 %v1056_v1, %v968_v5 }
 0x237   :  { %v1102_v44 = vmax.f32 %v1057_v7, 0.0  ;;  %v972_v13 = vpop.f32.mrf.mxu1 }
 0x238   :  { %v973_v33 = vadd.f32 %v972_v13, %v2902_v62  ;;  %v2129_v62 = vld [vmem:[%s3377_s5 + $0x74] sm:$0xf0]  ;;  %v2114_v13 = vld [vmem:[%s3377_s5 + $0x4] sm:$0xf] }
 0x239   :  { %v3054_v47 = vpack.c.bf16 %v1102_v44, %v1101_v9  ;;  %v2020_v9 = vld [vmem:[%s3377_s5 + $0x80] sm:$0xf]  ;;  %v2131_v44 = vld [vmem:[%s3377_s5 + $0x84] sm:$0xf0] }
 0x23a   :  { %1529 = vmatmul.bf16.gmra.mxu3 %v1973_v2 }
 0x23c   :  { %v1059_v23 = vpop.f32.mrf.mxu2 }
 0x23d   :  { %v1060_v49 = vadd.f32 %v1059_v23, %v971_v8  ;;  %v2021_v8 = vor.u32 %v2131_v44, %v2020_v9  ;;  %v2133_v23 = vld [vmem:[%s3377_s5 + $0x94] sm:$0xf0] }
 0x23f   :  { %v975_v4 = vpop.f32.mrf.mxu1  ;;  %v1103_v1 = vmax.f32 %v1060_v49, 0.0  ;;  %v2116_v49 = vld [vmem:[%s3377_s5 + $0x14] sm:$0xf] }
 0x240   :  { %v976_v36 = vadd.f32 %v975_v4, %v2910_v6  ;;  %v2012_v6 = vld [vmem:[%s3377_s5 + $0x70] sm:$0xf]  ;;  %v1966_v4 = vld [vmem:[%s3377_s5 + $0x18] sm:$0xf0] }
 0x241   :  { %v2013_v2 = vor.u32 %v2129_v62, %v2012_v6  ;;  %v2126_v6 = vld [vmem:[%s3377_s5 + $0x64] sm:$0xf]  ;;  %v2006_v62 = vld [vmem:[%s3377_s5 + $0x68] sm:$0xf0] }
 0x242   :  { %v2009_v44 = vor.u32 %v2126_v6, %v2006_v62 }
 0x244   :  { %v1061_v59 = vpop.f32.mrf.mxu2 }
 0x247   :  { %v977_v31 = vpop.f32.mrf.mxu1 }
 0x24a   :  { %1534 = vmatmul.bf16.gmra.mxu3 %v1981_v0  ;;  %v2135_v0 = vld [vmem:[%s3377_s5 + $0xa4] sm:$0xf0] }
 0x24c   :  { %v1064_v15 = vpop.f32.mrf.mxu2 }
 0x24d   :  { %v1065_v38 = vadd.f32 %v1064_v15, %v976_v36  ;;  %v1974_v15 = vld [vmem:[%s3377_s5 + $0x28] sm:$0xf0]  ;;  %v2060_v36 = vld [vmem:[%s3377_s5 + $0xd0] sm:$0xf] }
 0x24f   :  { %v980_v50 = vpop.f32.mrf.mxu1  ;;  %v1105_v21 = vmax.f32 %v1065_v38, 0.0 }
 0x250   :  { %v981_v22 = vadd.f32 %v980_v50, %v2862_v60  ;;  %v1062_v60 = vadd.f32 %v1061_v59, %v973_v33  ;;  %v2036_v59 = vld [vmem:[%s3377_s5 + $0xa0] sm:$0xf]  ;;  %v1998_v33 = vld [vmem:[%s3377_s5 + $0x58] sm:$0xf0] }
 0x251   :  { %v2037_v50 = vor.u32 %v2135_v0, %v2036_v59 }
 0x254   :  { %v1066_v29 = vpop.f32.mrf.mxu2 }
 0x257   :  { %v982_v16 = vpop.f32.mrf.mxu1 }
 0x258   :  { %v983_v14 = vadd.f32 %v982_v16, %v2900_v10  ;;  %v3143_v16 = vpop.permute.xlu2 %1263 }
 0x25a   :  { %1539 = vmatmul.bf16.gmra.mxu3 %v1989_v19  ;;  %v2044_v19 = vld [vmem:[%s3377_s5 + $0xb0] sm:$0xf] }
 0x25c   :  { %v1069_v48 = vpop.f32.mrf.mxu2 }
 0x25d   :  { %v1070_v10 = vadd.f32 %v1069_v48, %v981_v22  ;;  %v2137_v48 = vld [vmem:[%s3377_s5 + $0xb4] sm:$0xf0] }
 0x25f   :  { %v985_v61 = vpop.f32.mrf.mxu1  ;;  %v1107_v27 = vmax.f32 %v1070_v10, 0.0 }
 0x260   :  { %v986_v32 = vadd.f32 %v985_v61, %v2842_v12  ;;  %v978_v12 = vadd.f32 %v977_v31, %v2882_v20  ;;  %v1104_v20 = vmax.f32 %v1062_v60, 0.0  ;;  %v2118_v31 = vld [vmem:[%s3377_s5 + $0x24] sm:$0xf] }
 0x261   :  { %v1977_v56 = vor.u32 %v2118_v31, %v1974_v15 }
 0x262   :  { %v1067_v18 = vadd.f32 %v1066_v29, %v978_v12  ;;  %v1123_v7 = vpack.c.bf16 %v1104_v20, %v1103_v1  ;;  %v3138_v29 = vpop.permute.xlu1 %1338  ;;  %v2143_v1 = vld [vmem:[%s3377_s5 + $0xe4] sm:$0xf0] }
 0x264   :  { %v1071_v26 = vpop.f32.mrf.mxu2  ;;  %v1106_v42 = vmax.f32 %v1067_v18, 0.0 }
 0x265   :  { %v1072_v35 = vadd.f32 %v1071_v26, %v983_v14 }
 0x266   :  { %v1124_v34 = vpack.c.bf16 %v1106_v42, %v1105_v21 }
 0x267   :  { %v987_v51 = vpop.f32.mrf.mxu1  ;;  %v1108_v58 = vmax.f32 %v1072_v35, 0.0 }
 0x268   :  { %v988_v17 = vadd.f32 %v987_v51, %v2850_v24  ;;  %v3158_v51 = vpop.permute.xlu2 %1328 }
 0x269   :  { %v1125_v5 = vpack.c.bf16 %v1108_v58, %v1107_v27  ;;  %v2141_v58 = vld [vmem:[%s3377_s5 + $0xd4] sm:$0xf0] }
 0x26a   :  { %1544 = vmatmul.bf16.gmra.mxu3 %v1997_v41  ;;  %v3156_v61 = vpop.permute.xlu1 %1323  ;;  %v2045_v41 = vor.u32 %v2137_v48, %v2044_v19  ;;  %v2061_v38 = vor.u32 %v2141_v58, %v2060_v36  ;;  %v2130_v48 = vld [vmem:[%s3377_s5 + $0x84] sm:$0xf] }
 0x26c   :  { %v1074_v46 = vpop.f32.mrf.mxu2 }
 0x26d   :  { %v1075_v63 = vadd.f32 %v1074_v46, %v986_v32  ;;  %v1985_v46 = vor.u32 %v2120_v40, %v1982_v39  ;;  %v2022_v40 = vld [vmem:[%s3377_s5 + $0x88] sm:$0xf0] }
 0x26f   :  { %v1109_v25 = vmax.f32 %v1075_v63, 0.0  ;;  %v3167_v63 = vpop.permute.xlu0 %1333 }
 0x272   :  { %v3162_v14 = vpop.permute.xlu1 %1258 }
 0x274   :  { %v1076_v55 = vpop.f32.mrf.mxu2 }
 0x275   :  { %v1077_v30 = vadd.f32 %v1076_v55, %v988_v17  ;;  %v2052_v17 = vld [vmem:[%s3377_s5 + $0xc0] sm:$0xf]  ;;  %v1990_v55 = vld [vmem:[%s3377_s5 + $0x48] sm:$0xf0] }
 0x276   :  { %v2053_v22 = vor.u32 %v2139_v43, %v2052_v17  ;;  %v1993_v35 = vor.u32 %v2122_v54, %v1990_v55 }
 0x277   :  { %v1110_v24 = vmax.f32 %v1077_v30, 0.0  ;;  %v3178_v30 = vpop.permute.xlu2 %1313  ;;  %v3184_v10 = vpop.permute.xlu0 %1268 }
 0x279   :  { %v1126_v37 = vpack.c.bf16 %v1110_v24, %v1109_v25 }
 0x27a   :  { %1549 = vmatmul.bf16.gmra.mxu3 %v2005_v45  ;;  %v3182_v12 = vpop.permute.xlu1 %1243 }
 0x27b   :  { %1600 = vmatpush.bf16.msrb.mxu0 %v1126_v37  ;;  %v2124_v37 = vld [vmem:[%s3377_s5 + $0x54] sm:$0xf] }
 0x27c   :  { %v2001_v27 = vor.u32 %v2124_v37, %v1998_v33 }
 0x27f   :  { %1601 = vmatpush.bf16.msrb.mxu0 %v1125_v5  ;;  %v3186_v25 = vpop.permute.xlu2 %1248  ;;  %v3204_v60 = vpop.permute.xlu0 %1253 }
 0x282   :  { %v3193_v18 = vpop.permute.xlu1 %1308 }
 0x283   :  { %1602 = vmatpush.bf16.msrb.mxu0 %v1124_v34  ;;  %v2068_v34 = vld [vmem:[%s3377_s5 + $0xe0] sm:$0xf] }
 0x284   :  { %v2069_v9 = vor.u32 %v2143_v1, %v2068_v34 }
 0x287   :  { %1603 = vmatpush.bf16.msrb.mxu0 %v1123_v7  ;;  %v3206_v42 = vpop.permute.xlu2 %1233  ;;  %v3212_v20 = vpop.permute.xlu0 %1318 }
 0x28a   :  { %1554 = vmatmul.bf16.gmra.mxu3 %v2013_v2  ;;  %v3210_v21 = vpop.permute.xlu1 %1293 }
 0x28b   :  { %1604 = vmatpush.bf16.msrb.mxu0 %v3054_v47  ;;  %v1958_v47 = vld [vmem:[%s3377_s5 + $0x8] sm:$0xf0] }
 0x28f   :  { %1605 = vmatpush.bf16.msrb.mxu0 %v3045_v3  ;;  %v1961_v3 = vor.u32 %v2114_v13, %v1958_v47  ;;  %v3226_v7 = vpop.permute.xlu2 %1298  ;;  %v3232_v47 = vpop.permute.xlu0 %1303 }
 0x292   :  { %v3230_v13 = vpop.permute.xlu1 %1228 }
 0x293   :  { %1606 = vmatpush.bf16.msrb.mxu0 %v3036_v57  ;;  %v2028_v57 = vld [vmem:[%s3377_s5 + $0x90] sm:$0xf] }
 0x294   :  { %v2029_v11 = vor.u32 %v2133_v23, %v2028_v57  ;;  %v2076_v23 = vld [vmem:[%s3377_s5 + $0xf0] sm:$0xf] }
 0x297   :  { %1607 = vmatpush.bf16.msrb.mxu0 %v3024_v28  ;;  %v1969_v28 = vor.u32 %v2116_v49, %v1966_v4  ;;  %v2145_v49 = vld [vmem:[%s3377_s5 + $0xf4] sm:$0xf0]  ;;  %v2128_v4 = vld [vmem:[%s3377_s5 + $0x74] sm:$0xf] }
 0x298   :  { %v2077_v59 = vor.u32 %v2145_v49, %v2076_v23 }
 0x29a   :  { %1559 = vmatmul.bf16.gmra.mxu3 %v2021_v8  ;;  %1608 = vmatmul.bf16.vlgmr.msrb.gmra.mxu0 %v1961_v3  ;;  %v3234_v8 = vpop.permute.xlu2 %1283  ;;  %v1214_v57 = vpop.permute.xlu1 %1213 }
 0x29d   :  { %v3154_v26 = vpop.f32.mrf.mxu3 }
 0x2a2   :  { %v1219_v31 = vpop.permute.xlu2 %1218 }
 0x2a5   :  { %v3160_v32 = vpop.f32.mrf.mxu3 }
 0x2aa   :  { %1564 = vmatmul.bf16.gmra.mxu3 %v2029_v11  ;;  %1613 = vmatmul.bf16.gmra.mxu0 %v1969_v28  ;;  %v2014_v11 = vld [vmem:[%s3377_s5 + $0x78] sm:$0xf0]  ;;  %v3250_v28 = vpop.permute.xlu0 %1238  ;;  %v1204_v19 = vpop.permute.xlu2 %1203 }
 0x2ab   :  { %v2017_v0 = vor.u32 %v2128_v4, %v2014_v11 }
 0x2ad   :  { %v3180_v45 = vpop.f32.mrf.mxu3 }
 0x2ae   :  { %v1526_v1 = vadd.f32 %v3180_v45, %v1204_v19  ;;  %v2038_v45 = vld [vmem:[%s3377_s5 + $0xa8] sm:$0xf0] }
 0x2b2   :  { %v1199_v55 = vpop.permute.xlu2 %1198 }
 0x2b5   :  { %v3188_v24 = vpop.f32.mrf.mxu3 }
 0x2ba   :  { %1569 = vmatmul.bf16.gmra.mxu3 %v2037_v50  ;;  %1618 = vmatmul.bf16.gmra.mxu0 %v1977_v56  ;;  %v3252_v50 = vpop.permute.xlu1 %1278  ;;  %v1224_v56 = vpop.permute.xlu0 %1223 }
 0x2bd   :  { %v3208_v5 = vpop.f32.mrf.mxu3 }
 0x2c2   :  { %v1194_v39 = vpop.permute.xlu1 %1193  ;;  %v3261_v54 = vpop.permute.xlu0 %1288 }
 0x2c5   :  { %v3228_v2 = vpop.f32.mrf.mxu3 }
 0x2ca   :  { %1574 = vmatmul.bf16.gmra.mxu3 %v2045_v41  ;;  %1623 = vmatmul.bf16.gmra.mxu0 %v1985_v46  ;;  %v1521_v41 = vadd.f32 %v3154_v26, %v1194_v39  ;;  %v2025_v46 = vor.u32 %v2130_v48, %v2022_v40  ;;  %v3264_v33 = vpop.permute.xlu0 %1273  ;;  %v2030_v26 = vld [vmem:[%s3377_s5 + $0x98] sm:$0xf0]  ;;  %v1531_v48 = vadd.f32 %v3208_v5, %v1214_v57 }
 0x2cb   :  { %v2046_v5 = vld [vmem:[%s3377_s5 + $0xb8] sm:$0xf0] }
 0x2cd   :  { %v3236_v3 = vpop.f32.mrf.mxu3 }
 0x2d5   :  { %v1537_v15 = vpop.f32.mrf.mxu3 }
 0x2da   :  { %1579 = vmatmul.bf16.gmra.mxu3 %v2053_v22  ;;  %1628 = vmatmul.bf16.gmra.mxu0 %v1993_v35  ;;  %v1523_v22 = vadd.f32 %v3160_v32, %v1199_v55 }
 0x2dd   :  { %v1540_v34 = vpop.f32.mrf.mxu3 }
 0x2e5   :  { %v3276_v23 = vpop.f32.mrf.mxu3 }
 0x2ea   :  { %1584 = vmatmul.bf16.gmra.mxu3 %v2061_v38  ;;  %1633 = vmatmul.bf16.gmra.mxu0 %v2001_v27  ;;  %v2132_v38 = vld [vmem:[%s3377_s5 + $0x94] sm:$0xf] }
 0x2eb   :  { %v2033_v32 = vor.u32 %v2132_v38, %v2030_v26  ;;  %v1538_v26 = vadd.f32 %v1537_v15, %v3230_v13 }
 0x2fa   :  { %1589 = vmatmul.bf16.gmra.mxu3 %v2069_v9  ;;  %1638 = vmatmul.bf16.gmra.mxu0 %v2009_v44  ;;  %v1209_v9 = vpop.permute.xlu0 %1208 }
 0x2fb   :  { %v1528_v44 = vadd.f32 %v3188_v24, %v1209_v9  ;;  %v2138_v9 = vld [vmem:[%s3377_s5 + $0xc4] sm:$0xf] }
 0x30a   :  { %1594 = vmatmul.bf16.gmra.mxu3 %v2077_v59  ;;  %1643 = vmatmul.bf16.gmra.mxu0 %v2017_v0  ;;  %v2134_v0 = vld [vmem:[%s3377_s5 + $0xa4] sm:$0xf] }
 0x30b   :  { %v2041_v40 = vor.u32 %v2134_v0, %v2038_v45  ;;  %v2140_v0 = vld [vmem:[%s3377_s5 + $0xd4] sm:$0xf]  ;;  %v2062_v45 = vld [vmem:[%s3377_s5 + $0xd8] sm:$0xf0] }
 0x317   :  { %v1609_v17 = vpop.f32.mrf.mxu0 }
 0x318   :  { %v1610_v43 = vadd.f32 %v1609_v17, %v1521_v41  ;;  %v3287_v41 = vpop.f32.mrf.mxu3 }
 0x31a   :  { %1648 = vmatmul.bf16.gmra.mxu0 %v2025_v46  ;;  %v1689_v58 = vmax.f32 %v1610_v43, 0.0  ;;  %v1533_v46 = vadd.f32 %v3228_v2, %v1219_v31 }
 0x31f   :  { %v1611_v35 = vpop.f32.mrf.mxu0 }
 0x320   :  { %v1612_v36 = vadd.f32 %v1611_v35, %v1523_v22  ;;  %v1547_v35 = vpop.f32.mrf.mxu3 }
 0x322   :  { %v1690_v37 = vmax.f32 %v1612_v36, 0.0  ;;  %v2136_v36 = vld [vmem:[%s3377_s5 + $0xb4] sm:$0xf] }
 0x324   :  { %v3272_v27 = vpack.c.bf16 %v1690_v37, %v1689_v58  ;;  %v1536_v58 = vadd.f32 %v3236_v3, %v1224_v56  ;;  %v2049_v37 = vor.u32 %v2136_v36, %v2046_v5  ;;  %v1541_v56 = vadd.f32 %v1540_v34, %v3206_v42  ;;  %v2142_v34 = vld [vmem:[%s3377_s5 + $0xe4] sm:$0xf]  ;;  %v2144_v36 = vld [vmem:[%s3377_s5 + $0xf4] sm:$0xf]  ;;  %v2078_v5 = vld [vmem:[%s3377_s5 + $0xf8] sm:$0xf0] }
 0x327   :  { %v1614_v6 = vpop.f32.mrf.mxu0 }
 0x328   :  { %v1615_v62 = vadd.f32 %v1614_v6, %v1526_v1  ;;  %v1550_v31 = vpop.f32.mrf.mxu3 }
 0x32a   :  { %1653 = vmatmul.bf16.gmra.mxu0 %v2033_v32  ;;  %v1691_v11 = vmax.f32 %v1615_v62, 0.0 }
 0x32f   :  { %v1616_v49 = vpop.f32.mrf.mxu0 }
 0x330   :  { %v1617_v4 = vadd.f32 %v1616_v49, %v1528_v44  ;;  %v2054_v44 = vld [vmem:[%s3377_s5 + $0xc8] sm:$0xf0] }
 0x331   :  { %v2057_v49 = vor.u32 %v2138_v9, %v2054_v44 }
 0x332   :  { %v1692_v59 = vmax.f32 %v1617_v4, 0.0  ;;  %v1552_v4 = vpop.f32.mrf.mxu3 }
 0x334   :  { %v3284_v19 = vpack.c.bf16 %v1692_v59, %v1691_v11 }
 0x337   :  { %v1619_v24 = vpop.f32.mrf.mxu0 }
 0x338   :  { %v1620_v39 = vadd.f32 %v1619_v24, %v1531_v48  ;;  %v2065_v48 = vor.u32 %v2140_v0, %v2062_v45 }
 0x33a   :  { %1658 = vmatmul.bf16.gmra.mxu0 %v2041_v40  ;;  %v1693_v55 = vmax.f32 %v1620_v39, 0.0  ;;  %v1555_v59 = vpop.f32.mrf.mxu3  ;;  %v2070_v39 = vld [vmem:[%s3377_s5 + $0xe8] sm:$0xf0] }
 0x33f   :  { %v1621_v17 = vpop.f32.mrf.mxu0 }
 0x340   :  { %v1622_v43 = vadd.f32 %v1621_v17, %v1533_v46  ;;  %v2073_v17 = vor.u32 %v2142_v34, %v2070_v39 }
 0x342   :  { %v1694_v22 = vmax.f32 %v1622_v43, 0.0  ;;  %v1557_v24 = vpop.f32.mrf.mxu3 }
 0x344   :  { %v3296_v57 = vpack.c.bf16 %v1694_v22, %v1693_v55 }
 0x347   :  { %v1624_v38 = vpop.f32.mrf.mxu0 }
 0x348   :  { %v1625_v2 = vadd.f32 %v1624_v38, %v1536_v58  ;;  %v2081_v58 = vor.u32 %v2144_v36, %v2078_v5 }
 0x34a   :  { %1663 = vmatmul.bf16.gmra.mxu0 %v2049_v37  ;;  %v1695_v6 = vmax.f32 %v1625_v2, 0.0  ;;  %v1560_v46 = vpop.f32.mrf.mxu3  ;;  %v1556_v2 = vadd.f32 %v1555_v59, %v3143_v16 }
 0x34f   :  { %v1626_v1 = vpop.f32.mrf.mxu0 }
 0x350   :  { %v1627_v32 = vadd.f32 %v1626_v1, %v1538_v26  ;;  %v1553_v26 = vadd.f32 %v1552_v4, %v3162_v14  ;;  %v1558_v1 = vadd.f32 %v1557_v24, %v3184_v10  ;;  %v1543_v10 = vadd.f32 %v3276_v23, %v3250_v28 }
 0x351   :  { %v1561_v4 = vadd.f32 %v1560_v46, %v3264_v33 }
 0x352   :  { %v1696_v62 = vmax.f32 %v1627_v32, 0.0  ;;  %v1562_v55 = vpop.f32.mrf.mxu3 }
 0x354   :  { %v3306_v3 = vpack.c.bf16 %v1696_v62, %v1695_v6  ;;  %v1551_v62 = vadd.f32 %v1550_v31, %v3204_v60 }
 0x357   :  { %v1629_v11 = vpop.f32.mrf.mxu0 }
 0x358   :  { %v1630_v13 = vadd.f32 %v1629_v11, %v1541_v56  ;;  %v1548_v56 = vadd.f32 %v1547_v35, %v3186_v25 }
 0x35a   :  { %1668 = vmatmul.bf16.gmra.mxu0 %v2057_v49  ;;  %v1565_v38 = vpop.f32.mrf.mxu3 }
 0x35f   :  { %v1631_v15 = vpop.f32.mrf.mxu0 }
 0x360   :  { %v1632_v25 = vadd.f32 %v1631_v15, %v1543_v10  ;;  %v1566_v15 = vadd.f32 %v1565_v38, %v3234_v8 }
 0x362   :  { %v1567_v45 = vpop.f32.mrf.mxu3 }
 0x367   :  { %v1634_v40 = vpop.f32.mrf.mxu0 }
 0x36a   :  { %1673 = vmatmul.bf16.gmra.mxu0 %v2065_v48  ;;  %v1546_v48 = vadd.f32 %v3287_v41, %v3182_v12  ;;  %v1570_v41 = vpop.f32.mrf.mxu3 }
 0x36c   :  { %v1635_v60 = vadd.f32 %v1634_v40, %v1546_v48 }
 0x36f   :  { %v1636_v42 = vpop.f32.mrf.mxu0 }
 0x370   :  { %v1637_v16 = vadd.f32 %v1636_v42, %v1548_v56  ;;  %v1563_v42 = vadd.f32 %v1562_v55, %v3252_v50  ;;  %v3346_v50 = vld [vmem:[%s3379_s7] sm:$0xff]  ;;  %v1568_v55 = vadd.f32 %v1567_v45, %v3261_v54  ;;  %s2184_s7 = smov [#allocation2]  }
 0x371   :  { %s1783_s23 = sshll.u32 %s2184_s7, 4  ;;  %s1784_s23 = int_to_ptr.vmem [resolvable:$true] %s1783_s23 }
 0x372   :  { %v1700_v35 = vmax.f32 %v1637_v16, 0.0  ;;  %v1572_v5 = vpop.f32.mrf.mxu3 }
 0x373   :  { %v1573_v54 = vadd.f32 %v1572_v5, %v3226_v7 }
 0x377   :  { %v1639_v43 = vpop.f32.mrf.mxu0 }
 0x378   :  { %v1640_v49 = vadd.f32 %v1639_v43, %v1551_v62  ;;  %v1698_v43 = vmax.f32 %v1632_v25, 0.0 }
 0x37a   :  { %1678 = vmatmul.bf16.gmra.mxu0 %v2073_v17  ;;  %v1701_v31 = vmax.f32 %v1640_v49, 0.0  ;;  %v1699_v17 = vmax.f32 %v1635_v60, 0.0  ;;  %v1575_v38 = vpop.f32.mrf.mxu3 }
 0x37b   :  { %v1576_v45 = vadd.f32 %v1575_v38, %v3232_v47 }
 0x37c   :  { %v1726_v12 = vpack.c.bf16 %v1700_v35, %v1699_v17 }
 0x37f   :  { %v1641_v22 = vpop.f32.mrf.mxu0 }
 0x380   :  { %v1642_v9 = vadd.f32 %v1641_v22, %v1553_v26  ;;  %v1697_v22 = vmax.f32 %v1630_v13, 0.0  ;;  %v1745_v13 = vunpack.c.l.b16 %v3346_v50 }
 0x382   :  { %v1702_v59 = vmax.f32 %v1642_v9, 0.0  ;;  %v1725_v23 = vpack.c.bf16 %v1698_v43, %v1697_v22  ;;  %v1577_v9 = vpop.f32.mrf.mxu3 }
 0x383   :  { %v1578_v16 = vadd.f32 %v1577_v9, %v3193_v18 }
 0x384   :  { %v1727_v34 = vpack.c.bf16 %v1702_v59, %v1701_v31 }
 0x387   :  { %v1644_v37 = vpop.f32.mrf.mxu0 }
 0x388   :  { %v1645_v32 = vadd.f32 %v1644_v37, %v1556_v2 }
 0x38a   :  { %1683 = vmatmul.bf16.gmra.mxu0 %v2081_v58  ;;  %v1703_v11 = vmax.f32 %v1645_v32, 0.0  ;;  %v1571_v32 = vadd.f32 %v1570_v41, %v3210_v21 }
 0x38f   :  { %v1646_v6 = vpop.f32.mrf.mxu0 }
 0x390   :  { %v1647_v44 = vadd.f32 %v1646_v6, %v1558_v1 }
 0x392   :  { %v1704_v0 = vmax.f32 %v1647_v44, 0.0 }
 0x394   :  { %v1728_v14 = vpack.c.bf16 %v1704_v0, %v1703_v11  ;;  %v1580_v0 = vpop.f32.mrf.mxu3 }
 0x395   :  { %v1581_v7 = vadd.f32 %v1580_v0, %v3178_v30 }
 0x396   :  { %1751 = vmatpush.bf16.msra.mxu1 %v1728_v14 }
 0x397   :  { %v1649_v24 = vpop.f32.mrf.mxu0 }
 0x398   :  { %v1650_v39 = vadd.f32 %v1649_v24, %v1561_v4 }
 0x39a   :  { %1752 = vmatpush.bf16.msra.mxu1 %v1727_v34  ;;  %v1705_v40 = vmax.f32 %v1650_v39, 0.0 }
 0x39c   :  { %v1582_v59 = vpop.f32.mrf.mxu3 }
 0x39e   :  { %1753 = vmatpush.bf16.msra.mxu1 %v1726_v12 }
 0x39f   :  { %v1651_v28 = vpop.f32.mrf.mxu0 }
 0x3a0   :  { %v1652_v33 = vadd.f32 %v1651_v28, %v1563_v42 }
 0x3a2   :  { %v1706_v46 = vmax.f32 %v1652_v33, 0.0  ;;  %1754 = vmatpush.bf16.msra.mxu1 %v1725_v23 }
 0x3a4   :  { %v3338_v36 = vpack.c.bf16 %v1706_v46, %v1705_v40  ;;  %v1585_v25 = vpop.f32.mrf.mxu3 }
 0x3a6   :  { %1755 = vmatpush.bf16.msra.mxu1 %v3306_v3  ;;  %v1747_v3 = vpack.c.b16 %v1745_v13, %v1745_v13 }
 0x3a7   :  { %v1654_v58 = vpop.f32.mrf.mxu0 }
 0x3a8   :  { %v1655_v37 = vadd.f32 %v1654_v58, %v1566_v15 }
 0x3aa   :  { %1756 = vmatpush.bf16.msra.mxu1 %v3296_v57  ;;  %v1707_v26 = vmax.f32 %v1655_v37, 0.0 }
 0x3ac   :  { %v1587_v34 = vpop.f32.mrf.mxu3 }
 0x3ad   :  { %v1588_v58 = vadd.f32 %v1587_v34, %v3158_v51 }
 0x3ae   :  { %1757 = vmatpush.bf16.msra.mxu1 %v3284_v19 }
 0x3af   :  { %v1656_v2 = vpop.f32.mrf.mxu0 }
 0x3b0   :  { %v1657_v8 = vadd.f32 %v1656_v2, %v1568_v55  ;;  %v1586_v2 = vadd.f32 %v1585_v25, %v3156_v61  ;;  %v1746_v61 = vunpack.c.h.b16 %v3346_v50 }
 0x3b2   :  { %v1708_v1 = vmax.f32 %v1657_v8, 0.0  ;;  %1758 = vmatpush.bf16.msra.mxu1 %v3272_v27 }
 0x3b4   :  { %v3352_v57 = vpack.c.bf16 %v1708_v1, %v1707_v26  ;;  %v1590_v17 = vpop.f32.mrf.mxu3 }
 0x3b5   :  { %1759 = vmatmul.bf16.vlgmr.msra.gmra.mxu1 %v1747_v3  ;;  %v1591_v46 = vadd.f32 %v1590_v17, %v3167_v63 }
 0x3b7   :  { %v1659_v6 = vpop.f32.mrf.mxu0 }
 0x3b8   :  { %v1660_v62 = vadd.f32 %v1659_v6, %v1571_v32 }
 0x3ba   :  { %v1709_v56 = vmax.f32 %v1660_v62, 0.0 }
 0x3bc   :  { %v1592_v43 = vpop.f32.mrf.mxu3 }
 0x3bd   :  { %v1593_v23 = vadd.f32 %v1592_v43, %v3138_v29  ;;  %v1583_v29 = vadd.f32 %v1582_v59, %v3212_v20  ;;  %v1748_v20 = vpack.c.b16 %v1746_v61, %v1746_v61 }
 0x3bf   :  { %v1661_v44 = vpop.f32.mrf.mxu0 }
 0x3c0   :  { %v1662_v19 = vadd.f32 %v1661_v44, %v1573_v54 }
 0x3c2   :  { %v1710_v49 = vmax.f32 %v1662_v19, 0.0  ;;  %v1742_v19 = vpop.permute.xlu0 %1741 }
 0x3c4   :  { %v1731_v11 = vpack.c.bf16 %v1710_v49, %v1709_v56  ;;  %v1595_v18 = vpop.f32.mrf.mxu3 }
 0x3c5   :  { %v1596_v28 = vadd.f32 %v1595_v18, %v3122_v53 }
 0x3c7   :  { %v1664_v48 = vpop.f32.mrf.mxu0 }
 0x3c8   :  { %v1665_v27 = vadd.f32 %v1664_v48, %v1576_v45 }
 0x3ca   :  { %v1711_v10 = vmax.f32 %v1665_v27, 0.0 }
 0x3cc   :  { %v1597_v22 = vpop.f32.mrf.mxu3 }
 0x3cd   :  { %v1598_v30 = vadd.f32 %v1597_v22, %v3136_v52 }
 0x3cf   :  { %v1666_v14 = vpop.f32.mrf.mxu0 }
 0x3d0   :  { %v1667_v21 = vadd.f32 %v1666_v14, %v1578_v16 }
 0x3d2   :  { %v1712_v4 = vmax.f32 %v1667_v21, 0.0 }
 0x3d4   :  { %v1732_v60 = vpack.c.bf16 %v1712_v4, %v1711_v10 }
 0x3d7   :  { %v1669_v31 = vpop.f32.mrf.mxu0 }
 0x3d8   :  { %v1670_v24 = vadd.f32 %v1669_v31, %v1581_v7 }
 0x3da   :  { %v1713_v62 = vmax.f32 %v1670_v24, 0.0 }
 0x3df   :  { %v1671_v35 = vpop.f32.mrf.mxu0 }
 0x3e0   :  { %v1672_v26 = vadd.f32 %v1671_v35, %v1583_v29 }
 0x3e2   :  { %v1714_v6 = vmax.f32 %v1672_v26, 0.0 }
 0x3e4   :  { %v1733_v9 = vpack.c.bf16 %v1714_v6, %v1713_v62 }
 0x3e7   :  { %v1674_v39 = vpop.f32.mrf.mxu0 }
 0x3e8   :  { %v1675_v3 = vadd.f32 %v1674_v39, %v1586_v2 }
 0x3ea   :  { %v1715_v32 = vmax.f32 %v1675_v3, 0.0 }
 0x3ef   :  { %v1676_v47 = vpop.f32.mrf.mxu0 }
 0x3f0   :  { %v1677_v8 = vadd.f32 %v1676_v47, %v1588_v58 }
 0x3f2   :  { %v1716_v1 = vmax.f32 %v1677_v8, 0.0 }
 0x3f4   :  { %v1734_v51 = vpack.c.bf16 %v1716_v1, %v1715_v32 }
 0x3f7   :  { %v1679_v12 = vpop.f32.mrf.mxu0 }
 0x3f8   :  { %v1680_v37 = vadd.f32 %v1679_v12, %v1591_v46 }
 0x3fa   :  { %v1717_v52 = vmax.f32 %v1680_v37, 0.0 }
 0x3ff   :  { %v1681_v41 = vpop.f32.mrf.mxu0 }
 0x400   :  { %v1682_v15 = vadd.f32 %v1681_v41, %v1593_v23 }
 0x402   :  { %v1718_v38 = vmax.f32 %v1682_v15, 0.0 }
 0x404   :  { %v1735_v63 = vpack.c.bf16 %v1718_v38, %v1717_v52 }
 0x407   :  { %v1684_v42 = vpop.f32.mrf.mxu0 }
 0x408   :  { %v1685_v33 = vadd.f32 %v1684_v42, %v1596_v28 }
 0x40a   :  { %v1719_v13 = vmax.f32 %v1685_v33, 0.0 }
 0x40f   :  { %v1686_v40 = vpop.f32.mrf.mxu0 }
 0x410   :  { %v1687_v5 = vadd.f32 %v1686_v40, %v1598_v30 }
 0x412   :  { %v1720_v55 = vmax.f32 %v1687_v5, 0.0 }
 0x414   :  { %v1736_v53 = vpack.c.bf16 %v1720_v55, %v1719_v13 }
 0x416   :  { %1764 = vmatpush.bf16.msra.mxu2 %v1736_v53 }
 0x41a   :  { %1765 = vmatpush.bf16.msra.mxu2 %v1735_v63 }
 0x41e   :  { %1766 = vmatpush.bf16.msra.mxu2 %v1734_v51 }
 0x422   :  { %1767 = vmatpush.bf16.msra.mxu2 %v1733_v9 }
 0x426   :  { %1768 = vmatpush.bf16.msra.mxu2 %v1732_v60 }
 0x42a   :  { %1769 = vmatpush.bf16.msra.mxu2 %v1731_v11 }
 0x42e   :  { %1770 = vmatpush.bf16.msra.mxu2 %v3352_v57 }
 0x432   :  { %v1760_v54 = vpop.f32.mrf.mxu1  ;;  %1771 = vmatpush.bf16.msra.mxu2 %v3338_v36 }
 0x433   :  { %v1761_v56 = vadd.f32 %v1760_v54, %v1742_v19 }
 0x435   :  { %1772 = vmatmul.bf16.vlgmr.msra.gmra.mxu2 %v1748_v20 }
 0x43a   :  { %v1762_v44 = vpop.f32.mrf.mxu1 }
 0x4b8   :  { %v1773_v49 = vpop.f32.mrf.mxu2 }
 0x4b9   :  { %v1774_v11 = vadd.f32 %v1773_v49, %v1761_v56 }
 0x4bb   :  { %1777 = vst [vmem:[#allocation2] sm:$0xff] %v1774_v11 }
 0x4bc   :  { %1788 = dma.vmem_to_hbm [thread:$0]  %s1784_s23, 128, %s1786_s25, [#allocation3]  }
 0x4c0   :  { %v1775_v50 = vpop.f32.mrf.mxu2 }
 0x4c1   :  { %2181 = dma.done.wait [#allocation3], 128  }
 0x4c2   :  { %2182 = vsyncadd [#allocation3], 4294967168 }
 0x4c3   :  { %1793 = vsyncpa [#allocation3], 1 }

</bundles_post_ra>
